<compile_context>
chip_gen: v6e
topology: v6e:2x2x1
jax: 0.10.0
libtpu: 0.0.40
codegen_flags: <defaults>
</compile_context>

<pallas_src>
import functools

import jax
import jax.numpy as jnp
from jax import lax
from jax.experimental import pallas as pl
from jax.experimental.pallas import tpu as pltpu

NEG_SLOPE = 0.01  # F.leaky_relu default negative slope


def _leaky_relu(x):
    return jnp.where(x > 0, x, NEG_SLOPE * x)


# ----------------------------------------------------------------------------
# Fused Pallas kernel: encode -> (message passing core x timesteps) -> decode
# One grid step == one individual (graph) of the population.
# ----------------------------------------------------------------------------

def _fused_epd_kernel(
    timesteps,
    # per-graph inputs (leading grid dim of size 1)
    L_ref, C_ref, U_ref, A_ref,
    # encoder weights (resident)
    enc_l_w, enc_l_b, enc_c_w, enc_c_b, enc_u_w, enc_u_b,
    # Message_Passing_Core weights (resident)
    cc_ws, cc_wm, cc_wu, cc_b,      # clause update
    cl_ws, cl_wm, cl_wu, cl_b,      # literal update
    cu_wu, cu_wl, cu_wc, cu_b,      # global update
    # decoder weights (resident)
    da_wl, da_wc, da_wu, da_b,      # actor head (literal stream, 1 channel)
    dc_wl, dc_wc, dc_wu, dc_b,      # critic head (global stream, 1 channel)
    # outputs
    act_ref, val_ref,
):
    dot = functools.partial(jnp.dot, preferred_element_type=jnp.float32)

    L = L_ref[0]          # [n_lit, l_emb]
    C = C_ref[0]          # [n_cls, c_emb]
    U = U_ref[0]          # [1, u_emb]
    A = A_ref[0]          # [n_lit, n_cls]

    # ---- encode: nn.Conv1d(E, E, 1) == per-node linear
    L = dot(L, enc_l_w[...]) + enc_l_b[...]
    C = dot(C, enc_c_w[...]) + enc_c_b[...]
    U = dot(U, enc_u_w[...]) + enc_u_b[...]

    # ---- process: Message_Passing_Core x timesteps (statically unrolled)
    # TODO(synk): Message_Passing_Core source was not provided; reconstructed
    # as clause<-literal, literal<-clause, global<-pooled updates (sequential).
    for _ in range(timesteps):
        # clause messages = A^T @ L, without materializing A^T
        msg_c = lax.dot_general(A, L, (((0,), (0,)), ((), ())),
                                preferred_element_type=jnp.float32)  # [n_cls, l_emb]
        C_new = _leaky_relu(dot(C, cc_ws[...]) + dot(msg_c, cc_wm[...])
                            + dot(U, cc_wu[...]) + cc_b[...])
        # literal messages = A @ C_new
        msg_l = dot(A, C_new)                                        # [n_lit, c_emb]
        L_new = _leaky_relu(dot(L, cl_ws[...]) + dot(msg_l, cl_wm[...])
                            + dot(U, cl_wu[...]) + cl_b[...])
        # global update: max-pool both node streams (torchMax)
        pool_l = jnp.max(L_new, axis=0, keepdims=True)
        pool_c = jnp.max(C_new, axis=0, keepdims=True)
        U_new = _leaky_relu(dot(U, cu_wu[...]) + dot(pool_l, cu_wl[...])
                            + dot(pool_c, cu_wc[...]) + cu_b[...])
        L, C, U = L_new, C_new, U_new

    # ---- decode
    pool_l = jnp.max(L, axis=0, keepdims=True)
    pool_c = jnp.max(C, axis=0, keepdims=True)

    # actor: Pool_conv_sum_nonlin_pool, output stream = literal code, 1 channel
    act = _leaky_relu(dot(L, da_wl[...]) + dot(pool_c, da_wc[...])
                      + dot(U, da_wu[...]) + da_b[...])              # [n_lit, 1]

    # critic: Pool_conv_sum_nonlin_pool(pool=False), reconstructed on the
    # global stream.
    # TODO(synk): exact output-stream set of decoder_c unknown in the spec.
    val = _leaky_relu(dot(pool_l, dc_wl[...]) + dot(pool_c, dc_wc[...])
                      + dot(U, dc_wu[...]) + dc_b[...])              # [1, 1]

    act_ref[0] = act
    val_ref[0] = val


# ----------------------------------------------------------------------------
# pallas_call wrapper: one call for the whole population forward
# ----------------------------------------------------------------------------

_WEIGHT_ORDER = (
    ("enc_l", "w"), ("enc_l", "b"),
    ("enc_c", "w"), ("enc_c", "b"),
    ("enc_u", "w"), ("enc_u", "b"),
    ("core_c", "w_self"), ("core_c", "w_msg"), ("core_c", "w_u"), ("core_c", "b"),
    ("core_l", "w_self"), ("core_l", "w_msg"), ("core_l", "w_u"), ("core_l", "b"),
    ("core_u", "w_u"), ("core_u", "w_l"), ("core_u", "w_c"), ("core_u", "b"),
    ("dec_a", "w_l"), ("dec_a", "w_c"), ("dec_a", "w_u"), ("dec_a", "b"),
    ("dec_c", "w_l"), ("dec_c", "w_c"), ("dec_c", "w_u"), ("dec_c", "b"),
)


@functools.partial(jax.jit, static_argnums=(5,))
def _fused_forward(params, L_stack, C_stack, U_stack, A_stack, timesteps):
    pop, n_lit, _ = L_stack.shape
    weights = [params[m][k] for (m, k) in _WEIGHT_ORDER]

    # per-graph blocks: one graph per grid step
    def per_graph(shape):
        return pl.BlockSpec((1,) + tuple(shape[1:]), lambda p: (p, 0, 0))

    # resident weights: same block on every grid step -> DMA'd once
    def resident(shape):
        return pl.BlockSpec(tuple(shape), lambda p: (0, 0))

    in_specs = [per_graph(L_stack.shape), per_graph(C_stack.shape),
                per_graph(U_stack.shape), per_graph(A_stack.shape)]
    in_specs += [resident(w.shape) for w in weights]

    out_shape = (jax.ShapeDtypeStruct((pop, n_lit, 1), jnp.float32),
                 jax.ShapeDtypeStruct((pop, 1, 1), jnp.float32))
    out_specs = (pl.BlockSpec((1, n_lit, 1), lambda p: (p, 0, 0)),
                 pl.BlockSpec((1, 1, 1), lambda p: (p, 0, 0)))

    act, val = pl.pallas_call(
        functools.partial(_fused_epd_kernel, timesteps),
        out_shape=out_shape,
        grid=(pop,),
        in_specs=in_specs,
        out_specs=out_specs,
        compiler_params=pltpu.CompilerParams(
            dimension_semantics=("parallel",)),   # graphs are independent
    )(L_stack, C_stack, U_stack, A_stack, *weights)
    return act, val


def encode_process_decode_forward(params, population_embeddings,
                                  adjacency_matrices, timesteps):
    """Mirror of Encode_Process_Decode.forward.

    population_embeddings: list of (L [n_l, l_emb], C [n_c, c_emb], U [1, u_emb])
    adjacency_matrices:    list of A [n_l, n_c]
    Returns (actions: list of [n_l] arrays, values: [1] array).
    """
    # TODO(synk): all individuals must share n_literals / n_clauses here;
    # heterogeneous population sizes would need padding + per-graph length
    # scalars (scalar prefetch).
    L_stack = jnp.stack([e[0] for e in population_embeddings])
    C_stack = jnp.stack([e[1] for e in population_embeddings])
    U_stack = jnp.stack([e[2] for e in population_embeddings])
    A_stack = jnp.stack(adjacency_matrices)

    act, val = _fused_forward(params, L_stack, C_stack, U_stack, A_stack,
                              int(timesteps))

    actions = [act[i, :, 0] for i in range(act.shape[0])]   # .squeeze() -> [n_l]
    values = jnp.sum(val, axis=(0, 2))                       # sum over population -> [1]
    return actions, values


# ----------------------------------------------------------------------------
# Parameter init
# ----------------------------------------------------------------------------

def init_params(key, l_emb, c_emb, u_emb):
    def w(k, shape):
        return (0.1 * jax.random.normal(k, shape)).astype(jnp.float32)

    ks = list(jax.random.split(key, 18))
    params = {
        # encoders: Conv1d(E, E, 1) for literals, clauses, global
        "enc_l": {"w": w(ks[0], (l_emb, l_emb)), "b": jnp.zeros((1, l_emb), jnp.float32)},
        "enc_c": {"w": w(ks[1], (c_emb, c_emb)), "b": jnp.zeros((1, c_emb), jnp.float32)},
        "enc_u": {"w": w(ks[2], (u_emb, u_emb)), "b": jnp.zeros((1, u_emb), jnp.float32)},
        # Message_Passing_Core
        "core_c": {"w_self": w(ks[3], (c_emb, c_emb)), "w_msg": w(ks[4], (l_emb, c_emb)),
                   "w_u": w(ks[5], (u_emb, c_emb)), "b": jnp.zeros((1, c_emb), jnp.float32)},
        "core_l": {"w_self": w(ks[6], (l_emb, l_emb)), "w_msg": w(ks[7], (c_emb, l_emb)),
                   "w_u": w(ks[8], (u_emb, l_emb)), "b": jnp.zeros((1, l_emb), jnp.float32)},
        "core_u": {"w_u": w(ks[9], (u_emb, u_emb)), "w_l": w(ks[10], (l_emb, u_emb)),
                   "w_c": w(ks[11], (c_emb, u_emb)), "b": jnp.zeros((1, u_emb), jnp.float32)},
        # decoder_a (actor, literal output stream, 1 channel)
        "dec_a": {"w_l": w(ks[12], (l_emb, 1)), "w_c": w(ks[13], (c_emb, 1)),
                  "w_u": w(ks[14], (u_emb, 1)), "b": jnp.zeros((1, 1), jnp.float32)},
        # decoder_c (critic, 1 channel) -- independent keys (no aliasing)
        "dec_c": {"w_l": w(ks[15], (l_emb, 1)), "w_c": w(ks[16], (c_emb, 1)),
                  "w_u": w(ks[17], (u_emb, 1)), "b": jnp.zeros((1, 1), jnp.float32)},
    }
    return params


# ----------------------------------------------------------------------------
# main
# ----------------------------------------------------------------------------

if __name__ == "__main__":
    key = jax.random.PRNGKey(0)

    # embeddings = [(literal_code, 32), (clause_code, 32), (global_code, 16)]
    L_EMB, C_EMB, U_EMB = 32, 32, 16
    N_LIT, N_CLS = 16, 24
    POP, TIMESTEPS = 2, 2

    k_param, k_data = jax.random.split(key)
    params = init_params(k_param, L_EMB, C_EMB, U_EMB)

    population_embeddings = []
    adjacency_matrices = []
    for i in range(POP):
        L = jax.random.normal(jax.random.fold_in(k_data, 10 * i + 0), (N_LIT, L_EMB), jnp.float32)
        C = jax.random.normal(jax.random.fold_in(k_data, 10 * i + 1), (N_CLS, C_EMB), jnp.float32)
        U = jax.random.normal(jax.random.fold_in(k_data, 10 * i + 2), (1, U_EMB), jnp.float32)
        A = jax.random.bernoulli(
            jax.random.fold_in(k_data, 10 * i + 3), 0.3, (N_LIT, N_CLS)).astype(jnp.float32)
        population_embeddings.append((L, C, U))
        adjacency_matrices.append(A)

    actions, values = encode_process_decode_forward(
        params, population_embeddings, adjacency_matrices, TIMESTEPS)

    actions = [jax.block_until_ready(a) for a in actions]
    values = jax.block_until_ready(values)

    assert len(actions) == POP
    assert all(a.shape == (N_LIT,) for a in actions)
    assert values.shape == (1,)
    assert all(bool(jnp.all(jnp.isfinite(a))) for a in actions)
    assert bool(jnp.all(jnp.isfinite(values)))

    print("KERNEL_OK")
</pallas_src>

<mosaic_0001>
module attributes {stable_mosaic.version = 11 : i64} {
  func.func @_fused_epd_kernel(%arg0: i32, %arg1: memref<1x16x32xf32, #tpu.memory_space<vmem>>, %arg2: memref<1x24x32xf32, #tpu.memory_space<vmem>>, %arg3: memref<1x1x16xf32, #tpu.memory_space<vmem>>, %arg4: memref<1x16x24xf32, #tpu.memory_space<vmem>>, %arg5: memref<32x32xf32, #tpu.memory_space<vmem>>, %arg6: memref<1x32xf32, #tpu.memory_space<vmem>>, %arg7: memref<32x32xf32, #tpu.memory_space<vmem>>, %arg8: memref<1x32xf32, #tpu.memory_space<vmem>>, %arg9: memref<16x16xf32, #tpu.memory_space<vmem>>, %arg10: memref<1x16xf32, #tpu.memory_space<vmem>>, %arg11: memref<32x32xf32, #tpu.memory_space<vmem>>, %arg12: memref<32x32xf32, #tpu.memory_space<vmem>>, %arg13: memref<16x32xf32, #tpu.memory_space<vmem>>, %arg14: memref<1x32xf32, #tpu.memory_space<vmem>>, %arg15: memref<32x32xf32, #tpu.memory_space<vmem>>, %arg16: memref<32x32xf32, #tpu.memory_space<vmem>>, %arg17: memref<16x32xf32, #tpu.memory_space<vmem>>, %arg18: memref<1x32xf32, #tpu.memory_space<vmem>>, %arg19: memref<16x16xf32, #tpu.memory_space<vmem>>, %arg20: memref<32x16xf32, #tpu.memory_space<vmem>>, %arg21: memref<32x16xf32, #tpu.memory_space<vmem>>, %arg22: memref<1x16xf32, #tpu.memory_space<vmem>>, %arg23: memref<32x1xf32, #tpu.memory_space<vmem>>, %arg24: memref<32x1xf32, #tpu.memory_space<vmem>>, %arg25: memref<16x1xf32, #tpu.memory_space<vmem>>, %arg26: memref<1x1xf32, #tpu.memory_space<vmem>>, %arg27: memref<32x1xf32, #tpu.memory_space<vmem>>, %arg28: memref<32x1xf32, #tpu.memory_space<vmem>>, %arg29: memref<16x1xf32, #tpu.memory_space<vmem>>, %arg30: memref<1x1xf32, #tpu.memory_space<vmem>>, %arg31: memref<1x16x1xf32, #tpu.memory_space<vmem>>, %arg32: memref<1x1x1xf32, #tpu.memory_space<vmem>>) attributes {dimension_semantics = [#tpu.dimension_semantics<parallel>], iteration_bounds = array<i64: 2>, scalar_prefetch = 0 : i64, scratch_operands = 0 : i64, tpu.core_type = #tpu.core_type<tc>, window_params = [{transform_indices = @transform_0, window_bounds = array<i64: 1, 16, 32>}, {transform_indices = @transform_1, window_bounds = array<i64: 1, 24, 32>}, {transform_indices = @transform_2, window_bounds = array<i64: 1, 1, 16>}, {transform_indices = @transform_3, window_bounds = array<i64: 1, 16, 24>}, {pipeline_mode = #tpu.pipeline_mode<synchronous>, transform_indices = @transform_4, window_bounds = array<i64: 32, 32>}, {pipeline_mode = #tpu.pipeline_mode<synchronous>, transform_indices = @transform_5, window_bounds = array<i64: 1, 32>}, {pipeline_mode = #tpu.pipeline_mode<synchronous>, transform_indices = @transform_6, window_bounds = array<i64: 32, 32>}, {pipeline_mode = #tpu.pipeline_mode<synchronous>, transform_indices = @transform_7, window_bounds = array<i64: 1, 32>}, {pipeline_mode = #tpu.pipeline_mode<synchronous>, transform_indices = @transform_8, window_bounds = array<i64: 16, 16>}, {pipeline_mode = #tpu.pipeline_mode<synchronous>, transform_indices = @transform_9, window_bounds = array<i64: 1, 16>}, {pipeline_mode = #tpu.pipeline_mode<synchronous>, transform_indices = @transform_10, window_bounds = array<i64: 32, 32>}, {pipeline_mode = #tpu.pipeline_mode<synchronous>, transform_indices = @transform_11, window_bounds = array<i64: 32, 32>}, {pipeline_mode = #tpu.pipeline_mode<synchronous>, transform_indices = @transform_12, window_bounds = array<i64: 16, 32>}, {pipeline_mode = #tpu.pipeline_mode<synchronous>, transform_indices = @transform_13, window_bounds = array<i64: 1, 32>}, {pipeline_mode = #tpu.pipeline_mode<synchronous>, transform_indices = @transform_14, window_bounds = array<i64: 32, 32>}, {pipeline_mode = #tpu.pipeline_mode<synchronous>, transform_indices = @transform_15, window_bounds = array<i64: 32, 32>}, {pipeline_mode = #tpu.pipeline_mode<synchronous>, transform_indices = @transform_16, window_bounds = array<i64: 16, 32>}, {pipeline_mode = #tpu.pipeline_mode<synchronous>, transform_indices = @transform_17, window_bounds = array<i64: 1, 32>}, {pipeline_mode = #tpu.pipeline_mode<synchronous>, transform_indices = @transform_18, window_bounds = array<i64: 16, 16>}, {pipeline_mode = #tpu.pipeline_mode<synchronous>, transform_indices = @transform_19, window_bounds = array<i64: 32, 16>}, {pipeline_mode = #tpu.pipeline_mode<synchronous>, transform_indices = @transform_20, window_bounds = array<i64: 32, 16>}, {pipeline_mode = #tpu.pipeline_mode<synchronous>, transform_indices = @transform_21, window_bounds = array<i64: 1, 16>}, {pipeline_mode = #tpu.pipeline_mode<synchronous>, transform_indices = @transform_22, window_bounds = array<i64: 32, 1>}, {pipeline_mode = #tpu.pipeline_mode<synchronous>, transform_indices = @transform_23, window_bounds = array<i64: 32, 1>}, {pipeline_mode = #tpu.pipeline_mode<synchronous>, transform_indices = @transform_24, window_bounds = array<i64: 16, 1>}, {pipeline_mode = #tpu.pipeline_mode<synchronous>, transform_indices = @transform_25, window_bounds = array<i64: 1, 1>}, {pipeline_mode = #tpu.pipeline_mode<synchronous>, transform_indices = @transform_26, window_bounds = array<i64: 32, 1>}, {pipeline_mode = #tpu.pipeline_mode<synchronous>, transform_indices = @transform_27, window_bounds = array<i64: 32, 1>}, {pipeline_mode = #tpu.pipeline_mode<synchronous>, transform_indices = @transform_28, window_bounds = array<i64: 16, 1>}, {pipeline_mode = #tpu.pipeline_mode<synchronous>, transform_indices = @transform_29, window_bounds = array<i64: 1, 1>}, {transform_indices = @transform_30, window_bounds = array<i64: 1, 16, 1>}, {transform_indices = @transform_31, window_bounds = array<i64: 1, 1, 1>}]} {
    %c0 = arith.constant 0 : index
    %c0_0 = arith.constant 0 : index
    %c0_1 = arith.constant 0 : index
    %0 = vector.load %arg1[%c0, %c0_0, %c0_1] : memref<1x16x32xf32, #tpu.memory_space<vmem>>, vector<1x16x32xf32>
    %1 = vector.shape_cast %0 : vector<1x16x32xf32> to vector<16x32xf32>
    %c0_2 = arith.constant 0 : index
    %c0_3 = arith.constant 0 : index
    %c0_4 = arith.constant 0 : index
    %2 = vector.load %arg2[%c0_2, %c0_3, %c0_4] : memref<1x24x32xf32, #tpu.memory_space<vmem>>, vector<1x24x32xf32>
    %3 = vector.shape_cast %2 : vector<1x24x32xf32> to vector<24x32xf32>
    %c0_5 = arith.constant 0 : index
    %c0_6 = arith.constant 0 : index
    %c0_7 = arith.constant 0 : index
    %4 = vector.load %arg3[%c0_5, %c0_6, %c0_7] : memref<1x1x16xf32, #tpu.memory_space<vmem>>, vector<1x1x16xf32>
    %5 = vector.shape_cast %4 : vector<1x1x16xf32> to vector<1x16xf32>
    %c0_8 = arith.constant 0 : index
    %c0_9 = arith.constant 0 : index
    %c0_10 = arith.constant 0 : index
    %6 = vector.load %arg4[%c0_8, %c0_9, %c0_10] : memref<1x16x24xf32, #tpu.memory_space<vmem>>, vector<1x16x24xf32>
    %7 = vector.shape_cast %6 : vector<1x16x24xf32> to vector<16x24xf32>
    %c0_11 = arith.constant 0 : index
    %c0_12 = arith.constant 0 : index
    %8 = vector.load %arg5[%c0_11, %c0_12] : memref<32x32xf32, #tpu.memory_space<vmem>>, vector<32x32xf32>
    %cst = arith.constant dense<0.000000e+00> : vector<16x32xf32>
    %9 = tpu.matmul %1, %8, %cst {dimension_numbers = #tpu.dot_dimension_numbers<[1], [0], [0], [1], [0, 0, 1, 1], [], []>} : vector<16x32xf32>, vector<32x32xf32>, vector<16x32xf32> -> vector<16x32xf32>
    %c0_13 = arith.constant 0 : index
    %c0_14 = arith.constant 0 : index
    %10 = vector.load %arg6[%c0_13, %c0_14] : memref<1x32xf32, #tpu.memory_space<vmem>>, vector<1x32xf32>
    %11 = vector.broadcast %10 : vector<1x32xf32> to vector<16x32xf32>
    %12 = arith.addf %9, %11 : vector<16x32xf32>
    %c0_15 = arith.constant 0 : index
    %c0_16 = arith.constant 0 : index
    %13 = vector.load %arg7[%c0_15, %c0_16] : memref<32x32xf32, #tpu.memory_space<vmem>>, vector<32x32xf32>
    %cst_17 = arith.constant dense<0.000000e+00> : vector<24x32xf32>
    %14 = tpu.matmul %3, %13, %cst_17 {dimension_numbers = #tpu.dot_dimension_numbers<[1], [0], [0], [1], [0, 0, 1, 1], [], []>} : vector<24x32xf32>, vector<32x32xf32>, vector<24x32xf32> -> vector<24x32xf32>
    %c0_18 = arith.constant 0 : index
    %c0_19 = arith.constant 0 : index
    %15 = vector.load %arg8[%c0_18, %c0_19] : memref<1x32xf32, #tpu.memory_space<vmem>>, vector<1x32xf32>
    %16 = vector.broadcast %15 : vector<1x32xf32> to vector<24x32xf32>
    %17 = arith.addf %14, %16 : vector<24x32xf32>
    %c0_20 = arith.constant 0 : index
    %c0_21 = arith.constant 0 : index
    %18 = vector.load %arg9[%c0_20, %c0_21] : memref<16x16xf32, #tpu.memory_space<vmem>>, vector<16x16xf32>
    %cst_22 = arith.constant dense<0.000000e+00> : vector<1x16xf32>
    %19 = tpu.matmul %5, %18, %cst_22 {dimension_numbers = #tpu.dot_dimension_numbers<[1], [0], [0], [1], [0, 0, 1, 1], [], []>} : vector<1x16xf32>, vector<16x16xf32>, vector<1x16xf32> -> vector<1x16xf32>
    %c0_23 = arith.constant 0 : index
    %c0_24 = arith.constant 0 : index
    %20 = vector.load %arg10[%c0_23, %c0_24] : memref<1x16xf32, #tpu.memory_space<vmem>>, vector<1x16xf32>
    %21 = arith.addf %19, %20 : vector<1x16xf32>
    %cst_25 = arith.constant dense<0.000000e+00> : vector<24x32xf32>
    %22 = tpu.matmul %7, %12, %cst_25 {dimension_numbers = #tpu.dot_dimension_numbers<[0], [0], [1], [1], [0, 1, 1, 1], [], []>} : vector<16x24xf32>, vector<16x32xf32>, vector<24x32xf32> -> vector<24x32xf32>
    %c0_26 = arith.constant 0 : index
    %c0_27 = arith.constant 0 : index
    %23 = vector.load %arg11[%c0_26, %c0_27] : memref<32x32xf32, #tpu.memory_space<vmem>>, vector<32x32xf32>
    %cst_28 = arith.constant dense<0.000000e+00> : vector<24x32xf32>
    %24 = tpu.matmul %17, %23, %cst_28 {dimension_numbers = #tpu.dot_dimension_numbers<[1], [0], [0], [1], [0, 0, 1, 1], [], []>} : vector<24x32xf32>, vector<32x32xf32>, vector<24x32xf32> -> vector<24x32xf32>
    %c0_29 = arith.constant 0 : index
    %c0_30 = arith.constant 0 : index
    %25 = vector.load %arg12[%c0_29, %c0_30] : memref<32x32xf32, #tpu.memory_space<vmem>>, vector<32x32xf32>
    %cst_31 = arith.constant dense<0.000000e+00> : vector<24x32xf32>
    %26 = tpu.matmul %22, %25, %cst_31 {dimension_numbers = #tpu.dot_dimension_numbers<[1], [0], [0], [1], [0, 0, 1, 1], [], []>} : vector<24x32xf32>, vector<32x32xf32>, vector<24x32xf32> -> vector<24x32xf32>
    %27 = arith.addf %24, %26 : vector<24x32xf32>
    %c0_32 = arith.constant 0 : index
    %c0_33 = arith.constant 0 : index
    %28 = vector.load %arg13[%c0_32, %c0_33] : memref<16x32xf32, #tpu.memory_space<vmem>>, vector<16x32xf32>
    %cst_34 = arith.constant dense<0.000000e+00> : vector<1x32xf32>
    %29 = tpu.matmul %21, %28, %cst_34 {dimension_numbers = #tpu.dot_dimension_numbers<[1], [0], [0], [1], [0, 0, 1, 1], [], []>} : vector<1x16xf32>, vector<16x32xf32>, vector<1x32xf32> -> vector<1x32xf32>
    %30 = vector.broadcast %29 : vector<1x32xf32> to vector<24x32xf32>
    %31 = arith.addf %27, %30 : vector<24x32xf32>
    %c0_35 = arith.constant 0 : index
    %c0_36 = arith.constant 0 : index
    %32 = vector.load %arg14[%c0_35, %c0_36] : memref<1x32xf32, #tpu.memory_space<vmem>>, vector<1x32xf32>
    %33 = vector.broadcast %32 : vector<1x32xf32> to vector<24x32xf32>
    %34 = arith.addf %31, %33 : vector<24x32xf32>
    %cst_37 = arith.constant 0.000000e+00 : f32
    %35 = vector.broadcast %cst_37 : f32 to vector<24x32xf32>
    %36 = arith.cmpf ogt, %34, %35 : vector<24x32xf32>
    %cst_38 = arith.constant 0.00999999977 : f32
    %37 = vector.broadcast %cst_38 : f32 to vector<24x32xf32>
    %38 = arith.mulf %37, %34 : vector<24x32xf32>
    %39 = arith.select %36, %34, %38 : vector<24x32xi1>, vector<24x32xf32>
    %cst_39 = arith.constant dense<0.000000e+00> : vector<16x32xf32>
    %40 = tpu.matmul %7, %39, %cst_39 {dimension_numbers = #tpu.dot_dimension_numbers<[1], [0], [0], [1], [0, 0, 1, 1], [], []>} : vector<16x24xf32>, vector<24x32xf32>, vector<16x32xf32> -> vector<16x32xf32>
    %c0_40 = arith.constant 0 : index
    %c0_41 = arith.constant 0 : index
    %41 = vector.load %arg15[%c0_40, %c0_41] : memref<32x32xf32, #tpu.memory_space<vmem>>, vector<32x32xf32>
    %cst_42 = arith.constant dense<0.000000e+00> : vector<16x32xf32>
    %42 = tpu.matmul %12, %41, %cst_42 {dimension_numbers = #tpu.dot_dimension_numbers<[1], [0], [0], [1], [0, 0, 1, 1], [], []>} : vector<16x32xf32>, vector<32x32xf32>, vector<16x32xf32> -> vector<16x32xf32>
    %c0_43 = arith.constant 0 : index
    %c0_44 = arith.constant 0 : index
    %43 = vector.load %arg16[%c0_43, %c0_44] : memref<32x32xf32, #tpu.memory_space<vmem>>, vector<32x32xf32>
    %cst_45 = arith.constant dense<0.000000e+00> : vector<16x32xf32>
    %44 = tpu.matmul %40, %43, %cst_45 {dimension_numbers = #tpu.dot_dimension_numbers<[1], [0], [0], [1], [0, 0, 1, 1], [], []>} : vector<16x32xf32>, vector<32x32xf32>, vector<16x32xf32> -> vector<16x32xf32>
    %45 = arith.addf %42, %44 : vector<16x32xf32>
    %c0_46 = arith.constant 0 : index
    %c0_47 = arith.constant 0 : index
    %46 = vector.load %arg17[%c0_46, %c0_47] : memref<16x32xf32, #tpu.memory_space<vmem>>, vector<16x32xf32>
    %cst_48 = arith.constant dense<0.000000e+00> : vector<1x32xf32>
    %47 = tpu.matmul %21, %46, %cst_48 {dimension_numbers = #tpu.dot_dimension_numbers<[1], [0], [0], [1], [0, 0, 1, 1], [], []>} : vector<1x16xf32>, vector<16x32xf32>, vector<1x32xf32> -> vector<1x32xf32>
    %48 = vector.broadcast %47 : vector<1x32xf32> to vector<16x32xf32>
    %49 = arith.addf %45, %48 : vector<16x32xf32>
    %c0_49 = arith.constant 0 : index
    %c0_50 = arith.constant 0 : index
    %50 = vector.load %arg18[%c0_49, %c0_50] : memref<1x32xf32, #tpu.memory_space<vmem>>, vector<1x32xf32>
    %51 = vector.broadcast %50 : vector<1x32xf32> to vector<16x32xf32>
    %52 = arith.addf %49, %51 : vector<16x32xf32>
    %cst_51 = arith.constant 0.000000e+00 : f32
    %53 = vector.broadcast %cst_51 : f32 to vector<16x32xf32>
    %54 = arith.cmpf ogt, %52, %53 : vector<16x32xf32>
    %cst_52 = arith.constant 0.00999999977 : f32
    %55 = vector.broadcast %cst_52 : f32 to vector<16x32xf32>
    %56 = arith.mulf %55, %52 : vector<16x32xf32>
    %57 = arith.select %54, %52, %56 : vector<16x32xi1>, vector<16x32xf32>
    %cst_53 = arith.constant dense<0xFF800000> : vector<32xf32>
    %58 = vector.multi_reduction <maximumf>, %57, %cst_53 [0] : vector<16x32xf32> to vector<32xf32>
    %59 = vector.shape_cast %58 : vector<32xf32> to vector<1x32xf32>
    %cst_54 = arith.constant dense<0xFF800000> : vector<32xf32>
    %60 = vector.multi_reduction <maximumf>, %39, %cst_54 [0] : vector<24x32xf32> to vector<32xf32>
    %61 = vector.shape_cast %60 : vector<32xf32> to vector<1x32xf32>
    %c0_55 = arith.constant 0 : index
    %c0_56 = arith.constant 0 : index
    %62 = vector.load %arg19[%c0_55, %c0_56] : memref<16x16xf32, #tpu.memory_space<vmem>>, vector<16x16xf32>
    %cst_57 = arith.constant dense<0.000000e+00> : vector<1x16xf32>
    %63 = tpu.matmul %21, %62, %cst_57 {dimension_numbers = #tpu.dot_dimension_numbers<[1], [0], [0], [1], [0, 0, 1, 1], [], []>} : vector<1x16xf32>, vector<16x16xf32>, vector<1x16xf32> -> vector<1x16xf32>
    %c0_58 = arith.constant 0 : index
    %c0_59 = arith.constant 0 : index
    %64 = vector.load %arg20[%c0_58, %c0_59] : memref<32x16xf32, #tpu.memory_space<vmem>>, vector<32x16xf32>
    %cst_60 = arith.constant dense<0.000000e+00> : vector<1x16xf32>
    %65 = tpu.matmul %59, %64, %cst_60 {dimension_numbers = #tpu.dot_dimension_numbers<[1], [0], [0], [1], [0, 0, 1, 1], [], []>} : vector<1x32xf32>, vector<32x16xf32>, vector<1x16xf32> -> vector<1x16xf32>
    %66 = arith.addf %63, %65 : vector<1x16xf32>
    %c0_61 = arith.constant 0 : index
    %c0_62 = arith.constant 0 : index
    %67 = vector.load %arg21[%c0_61, %c0_62] : memref<32x16xf32, #tpu.memory_space<vmem>>, vector<32x16xf32>
    %cst_63 = arith.constant dense<0.000000e+00> : vector<1x16xf32>
    %68 = tpu.matmul %61, %67, %cst_63 {dimension_numbers = #tpu.dot_dimension_numbers<[1], [0], [0], [1], [0, 0, 1, 1], [], []>} : vector<1x32xf32>, vector<32x16xf32>, vector<1x16xf32> -> vector<1x16xf32>
    %69 = arith.addf %66, %68 : vector<1x16xf32>
    %c0_64 = arith.constant 0 : index
    %c0_65 = arith.constant 0 : index
    %70 = vector.load %arg22[%c0_64, %c0_65] : memref<1x16xf32, #tpu.memory_space<vmem>>, vector<1x16xf32>
    %71 = arith.addf %69, %70 : vector<1x16xf32>
    %cst_66 = arith.constant 0.000000e+00 : f32
    %72 = vector.broadcast %cst_66 : f32 to vector<1x16xf32>
    %73 = arith.cmpf ogt, %71, %72 : vector<1x16xf32>
    %cst_67 = arith.constant 0.00999999977 : f32
    %74 = vector.broadcast %cst_67 : f32 to vector<1x16xf32>
    %75 = arith.mulf %74, %71 : vector<1x16xf32>
    %76 = arith.select %73, %71, %75 : vector<1x16xi1>, vector<1x16xf32>
    %cst_68 = arith.constant dense<0.000000e+00> : vector<24x32xf32>
    %77 = tpu.matmul %7, %57, %cst_68 {dimension_numbers = #tpu.dot_dimension_numbers<[0], [0], [1], [1], [0, 1, 1, 1], [], []>} : vector<16x24xf32>, vector<16x32xf32>, vector<24x32xf32> -> vector<24x32xf32>
    %c0_69 = arith.constant 0 : index
    %c0_70 = arith.constant 0 : index
    %78 = vector.load %arg11[%c0_69, %c0_70] : memref<32x32xf32, #tpu.memory_space<vmem>>, vector<32x32xf32>
    %cst_71 = arith.constant dense<0.000000e+00> : vector<24x32xf32>
    %79 = tpu.matmul %39, %78, %cst_71 {dimension_numbers = #tpu.dot_dimension_numbers<[1], [0], [0], [1], [0, 0, 1, 1], [], []>} : vector<24x32xf32>, vector<32x32xf32>, vector<24x32xf32> -> vector<24x32xf32>
    %c0_72 = arith.constant 0 : index
    %c0_73 = arith.constant 0 : index
    %80 = vector.load %arg12[%c0_72, %c0_73] : memref<32x32xf32, #tpu.memory_space<vmem>>, vector<32x32xf32>
    %cst_74 = arith.constant dense<0.000000e+00> : vector<24x32xf32>
    %81 = tpu.matmul %77, %80, %cst_74 {dimension_numbers = #tpu.dot_dimension_numbers<[1], [0], [0], [1], [0, 0, 1, 1], [], []>} : vector<24x32xf32>, vector<32x32xf32>, vector<24x32xf32> -> vector<24x32xf32>
    %82 = arith.addf %79, %81 : vector<24x32xf32>
    %c0_75 = arith.constant 0 : index
    %c0_76 = arith.constant 0 : index
    %83 = vector.load %arg13[%c0_75, %c0_76] : memref<16x32xf32, #tpu.memory_space<vmem>>, vector<16x32xf32>
    %cst_77 = arith.constant dense<0.000000e+00> : vector<1x32xf32>
    %84 = tpu.matmul %76, %83, %cst_77 {dimension_numbers = #tpu.dot_dimension_numbers<[1], [0], [0], [1], [0, 0, 1, 1], [], []>} : vector<1x16xf32>, vector<16x32xf32>, vector<1x32xf32> -> vector<1x32xf32>
    %85 = vector.broadcast %84 : vector<1x32xf32> to vector<24x32xf32>
    %86 = arith.addf %82, %85 : vector<24x32xf32>
    %c0_78 = arith.constant 0 : index
    %c0_79 = arith.constant 0 : index
    %87 = vector.load %arg14[%c0_78, %c0_79] : memref<1x32xf32, #tpu.memory_space<vmem>>, vector<1x32xf32>
    %88 = vector.broadcast %87 : vector<1x32xf32> to vector<24x32xf32>
    %89 = arith.addf %86, %88 : vector<24x32xf32>
    %cst_80 = arith.constant 0.000000e+00 : f32
    %90 = vector.broadcast %cst_80 : f32 to vector<24x32xf32>
    %91 = arith.cmpf ogt, %89, %90 : vector<24x32xf32>
    %cst_81 = arith.constant 0.00999999977 : f32
    %92 = vector.broadcast %cst_81 : f32 to vector<24x32xf32>
    %93 = arith.mulf %92, %89 : vector<24x32xf32>
    %94 = arith.select %91, %89, %93 : vector<24x32xi1>, vector<24x32xf32>
    %cst_82 = arith.constant dense<0.000000e+00> : vector<16x32xf32>
    %95 = tpu.matmul %7, %94, %cst_82 {dimension_numbers = #tpu.dot_dimension_numbers<[1], [0], [0], [1], [0, 0, 1, 1], [], []>} : vector<16x24xf32>, vector<24x32xf32>, vector<16x32xf32> -> vector<16x32xf32>
    %c0_83 = arith.constant 0 : index
    %c0_84 = arith.constant 0 : index
    %96 = vector.load %arg15[%c0_83, %c0_84] : memref<32x32xf32, #tpu.memory_space<vmem>>, vector<32x32xf32>
    %cst_85 = arith.constant dense<0.000000e+00> : vector<16x32xf32>
    %97 = tpu.matmul %57, %96, %cst_85 {dimension_numbers = #tpu.dot_dimension_numbers<[1], [0], [0], [1], [0, 0, 1, 1], [], []>} : vector<16x32xf32>, vector<32x32xf32>, vector<16x32xf32> -> vector<16x32xf32>
    %c0_86 = arith.constant 0 : index
    %c0_87 = arith.constant 0 : index
    %98 = vector.load %arg16[%c0_86, %c0_87] : memref<32x32xf32, #tpu.memory_space<vmem>>, vector<32x32xf32>
    %cst_88 = arith.constant dense<0.000000e+00> : vector<16x32xf32>
    %99 = tpu.matmul %95, %98, %cst_88 {dimension_numbers = #tpu.dot_dimension_numbers<[1], [0], [0], [1], [0, 0, 1, 1], [], []>} : vector<16x32xf32>, vector<32x32xf32>, vector<16x32xf32> -> vector<16x32xf32>
    %100 = arith.addf %97, %99 : vector<16x32xf32>
    %c0_89 = arith.constant 0 : index
    %c0_90 = arith.constant 0 : index
    %101 = vector.load %arg17[%c0_89, %c0_90] : memref<16x32xf32, #tpu.memory_space<vmem>>, vector<16x32xf32>
    %cst_91 = arith.constant dense<0.000000e+00> : vector<1x32xf32>
    %102 = tpu.matmul %76, %101, %cst_91 {dimension_numbers = #tpu.dot_dimension_numbers<[1], [0], [0], [1], [0, 0, 1, 1], [], []>} : vector<1x16xf32>, vector<16x32xf32>, vector<1x32xf32> -> vector<1x32xf32>
    %103 = vector.broadcast %102 : vector<1x32xf32> to vector<16x32xf32>
    %104 = arith.addf %100, %103 : vector<16x32xf32>
    %c0_92 = arith.constant 0 : index
    %c0_93 = arith.constant 0 : index
    %105 = vector.load %arg18[%c0_92, %c0_93] : memref<1x32xf32, #tpu.memory_space<vmem>>, vector<1x32xf32>
    %106 = vector.broadcast %105 : vector<1x32xf32> to vector<16x32xf32>
    %107 = arith.addf %104, %106 : vector<16x32xf32>
    %cst_94 = arith.constant 0.000000e+00 : f32
    %108 = vector.broadcast %cst_94 : f32 to vector<16x32xf32>
    %109 = arith.cmpf ogt, %107, %108 : vector<16x32xf32>
    %cst_95 = arith.constant 0.00999999977 : f32
    %110 = vector.broadcast %cst_95 : f32 to vector<16x32xf32>
    %111 = arith.mulf %110, %107 : vector<16x32xf32>
    %112 = arith.select %109, %107, %111 : vector<16x32xi1>, vector<16x32xf32>
    %cst_96 = arith.constant dense<0xFF800000> : vector<32xf32>
    %113 = vector.multi_reduction <maximumf>, %112, %cst_96 [0] : vector<16x32xf32> to vector<32xf32>
    %114 = vector.shape_cast %113 : vector<32xf32> to vector<1x32xf32>
    %cst_97 = arith.constant dense<0xFF800000> : vector<32xf32>
    %115 = vector.multi_reduction <maximumf>, %94, %cst_97 [0] : vector<24x32xf32> to vector<32xf32>
    %116 = vector.shape_cast %115 : vector<32xf32> to vector<1x32xf32>
    %c0_98 = arith.constant 0 : index
    %c0_99 = arith.constant 0 : index
    %117 = vector.load %arg19[%c0_98, %c0_99] : memref<16x16xf32, #tpu.memory_space<vmem>>, vector<16x16xf32>
    %cst_100 = arith.constant dense<0.000000e+00> : vector<1x16xf32>
    %118 = tpu.matmul %76, %117, %cst_100 {dimension_numbers = #tpu.dot_dimension_numbers<[1], [0], [0], [1], [0, 0, 1, 1], [], []>} : vector<1x16xf32>, vector<16x16xf32>, vector<1x16xf32> -> vector<1x16xf32>
    %c0_101 = arith.constant 0 : index
    %c0_102 = arith.constant 0 : index
    %119 = vector.load %arg20[%c0_101, %c0_102] : memref<32x16xf32, #tpu.memory_space<vmem>>, vector<32x16xf32>
    %cst_103 = arith.constant dense<0.000000e+00> : vector<1x16xf32>
    %120 = tpu.matmul %114, %119, %cst_103 {dimension_numbers = #tpu.dot_dimension_numbers<[1], [0], [0], [1], [0, 0, 1, 1], [], []>} : vector<1x32xf32>, vector<32x16xf32>, vector<1x16xf32> -> vector<1x16xf32>
    %121 = arith.addf %118, %120 : vector<1x16xf32>
    %c0_104 = arith.constant 0 : index
    %c0_105 = arith.constant 0 : index
    %122 = vector.load %arg21[%c0_104, %c0_105] : memref<32x16xf32, #tpu.memory_space<vmem>>, vector<32x16xf32>
    %cst_106 = arith.constant dense<0.000000e+00> : vector<1x16xf32>
    %123 = tpu.matmul %116, %122, %cst_106 {dimension_numbers = #tpu.dot_dimension_numbers<[1], [0], [0], [1], [0, 0, 1, 1], [], []>} : vector<1x32xf32>, vector<32x16xf32>, vector<1x16xf32> -> vector<1x16xf32>
    %124 = arith.addf %121, %123 : vector<1x16xf32>
    %c0_107 = arith.constant 0 : index
    %c0_108 = arith.constant 0 : index
    %125 = vector.load %arg22[%c0_107, %c0_108] : memref<1x16xf32, #tpu.memory_space<vmem>>, vector<1x16xf32>
    %126 = arith.addf %124, %125 : vector<1x16xf32>
    %cst_109 = arith.constant 0.000000e+00 : f32
    %127 = vector.broadcast %cst_109 : f32 to vector<1x16xf32>
    %128 = arith.cmpf ogt, %126, %127 : vector<1x16xf32>
    %cst_110 = arith.constant 0.00999999977 : f32
    %129 = vector.broadcast %cst_110 : f32 to vector<1x16xf32>
    %130 = arith.mulf %129, %126 : vector<1x16xf32>
    %131 = arith.select %128, %126, %130 : vector<1x16xi1>, vector<1x16xf32>
    %cst_111 = arith.constant dense<0xFF800000> : vector<32xf32>
    %132 = vector.multi_reduction <maximumf>, %112, %cst_111 [0] : vector<16x32xf32> to vector<32xf32>
    %133 = vector.shape_cast %132 : vector<32xf32> to vector<1x32xf32>
    %cst_112 = arith.constant dense<0xFF800000> : vector<32xf32>
    %134 = vector.multi_reduction <maximumf>, %94, %cst_112 [0] : vector<24x32xf32> to vector<32xf32>
    %135 = vector.shape_cast %134 : vector<32xf32> to vector<1x32xf32>
    %c0_113 = arith.constant 0 : index
    %c0_114 = arith.constant 0 : index
    %136 = vector.load %arg23[%c0_113, %c0_114] : memref<32x1xf32, #tpu.memory_space<vmem>>, vector<32x1xf32>
    %cst_115 = arith.constant dense<0.000000e+00> : vector<16x1xf32>
    %137 = tpu.matmul %112, %136, %cst_115 {dimension_numbers = #tpu.dot_dimension_numbers<[1], [0], [0], [1], [0, 0, 1, 1], [], []>} : vector<16x32xf32>, vector<32x1xf32>, vector<16x1xf32> -> vector<16x1xf32>
    %c0_116 = arith.constant 0 : index
    %c0_117 = arith.constant 0 : index
    %138 = vector.load %arg24[%c0_116, %c0_117] : memref<32x1xf32, #tpu.memory_space<vmem>>, vector<32x1xf32>
    %cst_118 = arith.constant dense<0.000000e+00> : vector<1x1xf32>
    %139 = tpu.matmul %135, %138, %cst_118 {dimension_numbers = #tpu.dot_dimension_numbers<[1], [0], [0], [1], [0, 0, 1, 1], [], []>} : vector<1x32xf32>, vector<32x1xf32>, vector<1x1xf32> -> vector<1x1xf32>
    %140 = vector.broadcast %139 : vector<1x1xf32> to vector<16x1xf32>
    %141 = arith.addf %137, %140 : vector<16x1xf32>
    %c0_119 = arith.constant 0 : index
    %c0_120 = arith.constant 0 : index
    %142 = vector.load %arg25[%c0_119, %c0_120] : memref<16x1xf32, #tpu.memory_space<vmem>>, vector<16x1xf32>
    %cst_121 = arith.constant dense<0.000000e+00> : vector<1x1xf32>
    %143 = tpu.matmul %131, %142, %cst_121 {dimension_numbers = #tpu.dot_dimension_numbers<[1], [0], [0], [1], [0, 0, 1, 1], [], []>} : vector<1x16xf32>, vector<16x1xf32>, vector<1x1xf32> -> vector<1x1xf32>
    %144 = vector.broadcast %143 : vector<1x1xf32> to vector<16x1xf32>
    %145 = arith.addf %141, %144 : vector<16x1xf32>
    %c0_122 = arith.constant 0 : index
    %c0_123 = arith.constant 0 : index
    %146 = vector.load %arg26[%c0_122, %c0_123] : memref<1x1xf32, #tpu.memory_space<vmem>>, vector<1x1xf32>
    %147 = vector.broadcast %146 : vector<1x1xf32> to vector<16x1xf32>
    %148 = arith.addf %145, %147 : vector<16x1xf32>
    %cst_124 = arith.constant 0.000000e+00 : f32
    %149 = vector.broadcast %cst_124 : f32 to vector<16x1xf32>
    %150 = arith.cmpf ogt, %148, %149 : vector<16x1xf32>
    %cst_125 = arith.constant 0.00999999977 : f32
    %151 = vector.broadcast %cst_125 : f32 to vector<16x1xf32>
    %152 = arith.mulf %151, %148 : vector<16x1xf32>
    %153 = arith.select %150, %148, %152 : vector<16x1xi1>, vector<16x1xf32>
    %c0_126 = arith.constant 0 : index
    %c0_127 = arith.constant 0 : index
    %154 = vector.load %arg27[%c0_126, %c0_127] : memref<32x1xf32, #tpu.memory_space<vmem>>, vector<32x1xf32>
    %cst_128 = arith.constant dense<0.000000e+00> : vector<1x1xf32>
    %155 = tpu.matmul %133, %154, %cst_128 {dimension_numbers = #tpu.dot_dimension_numbers<[1], [0], [0], [1], [0, 0, 1, 1], [], []>} : vector<1x32xf32>, vector<32x1xf32>, vector<1x1xf32> -> vector<1x1xf32>
    %c0_129 = arith.constant 0 : index
    %c0_130 = arith.constant 0 : index
    %156 = vector.load %arg28[%c0_129, %c0_130] : memref<32x1xf32, #tpu.memory_space<vmem>>, vector<32x1xf32>
    %cst_131 = arith.constant dense<0.000000e+00> : vector<1x1xf32>
    %157 = tpu.matmul %135, %156, %cst_131 {dimension_numbers = #tpu.dot_dimension_numbers<[1], [0], [0], [1], [0, 0, 1, 1], [], []>} : vector<1x32xf32>, vector<32x1xf32>, vector<1x1xf32> -> vector<1x1xf32>
    %158 = arith.addf %155, %157 : vector<1x1xf32>
    %c0_132 = arith.constant 0 : index
    %c0_133 = arith.constant 0 : index
    %159 = vector.load %arg29[%c0_132, %c0_133] : memref<16x1xf32, #tpu.memory_space<vmem>>, vector<16x1xf32>
    %cst_134 = arith.constant dense<0.000000e+00> : vector<1x1xf32>
    %160 = tpu.matmul %131, %159, %cst_134 {dimension_numbers = #tpu.dot_dimension_numbers<[1], [0], [0], [1], [0, 0, 1, 1], [], []>} : vector<1x16xf32>, vector<16x1xf32>, vector<1x1xf32> -> vector<1x1xf32>
    %161 = arith.addf %158, %160 : vector<1x1xf32>
    %c0_135 = arith.constant 0 : index
    %c0_136 = arith.constant 0 : index
    %162 = vector.load %arg30[%c0_135, %c0_136] : memref<1x1xf32, #tpu.memory_space<vmem>>, vector<1x1xf32>
    %163 = arith.addf %161, %162 : vector<1x1xf32>
    %cst_137 = arith.constant 0.000000e+00 : f32
    %164 = vector.broadcast %cst_137 : f32 to vector<1x1xf32>
    %165 = arith.cmpf ogt, %163, %164 : vector<1x1xf32>
    %cst_138 = arith.constant 0.00999999977 : f32
    %166 = vector.broadcast %cst_138 : f32 to vector<1x1xf32>
    %167 = arith.mulf %166, %163 : vector<1x1xf32>
    %168 = arith.select %165, %163, %167 : vector<1x1xi1>, vector<1x1xf32>
    %c0_139 = arith.constant 0 : index
    %c0_140 = arith.constant 0 : index
    %c0_141 = arith.constant 0 : index
    %169 = vector.load %arg31[%c0_139, %c0_140, %c0_141] : memref<1x16x1xf32, #tpu.memory_space<vmem>>, vector<1x16x1xf32>
    %170 = vector.shape_cast %169 : vector<1x16x1xf32> to vector<16x1xf32>
    %171 = vector.shape_cast %153 : vector<16x1xf32> to vector<1x16x1xf32>
    tpu.vector_store %arg31[%c0_139, %c0_140, %c0_141], %171 {strides = array<i32>} : memref<1x16x1xf32, #tpu.memory_space<vmem>>, vector<1x16x1xf32>,
    %c0_142 = arith.constant 0 : index
    %c0_143 = arith.constant 0 : index
    %c0_144 = arith.constant 0 : index
    %172 = vector.load %arg32[%c0_142, %c0_143, %c0_144] : memref<1x1x1xf32, #tpu.memory_space<vmem>>, vector<1x1x1xf32>
    %173 = vector.shape_cast %172 : vector<1x1x1xf32> to vector<1x1xf32>
    %174 = vector.shape_cast %168 : vector<1x1xf32> to vector<1x1x1xf32>
    tpu.vector_store %arg32[%c0_142, %c0_143, %c0_144], %174 {strides = array<i32>} : memref<1x1x1xf32, #tpu.memory_space<vmem>>, vector<1x1x1xf32>,
    return
  }
  func.func @transform_0(%arg0: i32) -> (i32, i32, i32) {
    %c0_i32 = arith.constant 0 : i32
    %c0_i32_0 = arith.constant 0 : i32
    %c0_i32_1 = arith.constant 0 : i32
    return %arg0, %c0_i32, %c0_i32_0 : i32, i32, i32
  }
  func.func @transform_1(%arg0: i32) -> (i32, i32, i32) {
    %c0_i32 = arith.constant 0 : i32
    %c0_i32_0 = arith.constant 0 : i32
    %c0_i32_1 = arith.constant 0 : i32
    return %arg0, %c0_i32, %c0_i32_0 : i32, i32, i32
  }
  func.func @transform_2(%arg0: i32) -> (i32, i32, i32) {
    %c0_i32 = arith.constant 0 : i32
    %c0_i32_0 = arith.constant 0 : i32
    %c0_i32_1 = arith.constant 0 : i32
    return %arg0, %c0_i32, %c0_i32_0 : i32, i32, i32
  }
  func.func @transform_3(%arg0: i32) -> (i32, i32, i32) {
    %c0_i32 = arith.constant 0 : i32
    %c0_i32_0 = arith.constant 0 : i32
    %c0_i32_1 = arith.constant 0 : i32
    return %arg0, %c0_i32, %c0_i32_0 : i32, i32, i32
  }
  func.func @transform_4(%arg0: i32) -> (i32, i32) {
    %c0_i32 = arith.constant 0 : i32
    %c0_i32_0 = arith.constant 0 : i32
    %c0_i32_1 = arith.constant 0 : i32
    return %c0_i32, %c0_i32_0 : i32, i32
  }
  func.func @transform_5(%arg0: i32) -> (i32, i32) {
    %c0_i32 = arith.constant 0 : i32
    %c0_i32_0 = arith.constant 0 : i32
    %c0_i32_1 = arith.constant 0 : i32
    return %c0_i32, %c0_i32_0 : i32, i32
  }
  func.func @transform_6(%arg0: i32) -> (i32, i32) {
    %c0_i32 = arith.constant 0 : i32
    %c0_i32_0 = arith.constant 0 : i32
    %c0_i32_1 = arith.constant 0 : i32
    return %c0_i32, %c0_i32_0 : i32, i32
  }
  func.func @transform_7(%arg0: i32) -> (i32, i32) {
    %c0_i32 = arith.constant 0 : i32
    %c0_i32_0 = arith.constant 0 : i32
    %c0_i32_1 = arith.constant 0 : i32
    return %c0_i32, %c0_i32_0 : i32, i32
  }
  func.func @transform_8(%arg0: i32) -> (i32, i32) {
    %c0_i32 = arith.constant 0 : i32
    %c0_i32_0 = arith.constant 0 : i32
    %c0_i32_1 = arith.constant 0 : i32
    return %c0_i32, %c0_i32_0 : i32, i32
  }
  func.func @transform_9(%arg0: i32) -> (i32, i32) {
    %c0_i32 = arith.constant 0 : i32
    %c0_i32_0 = arith.constant 0 : i32
    %c0_i32_1 = arith.constant 0 : i32
    return %c0_i32, %c0_i32_0 : i32, i32
  }
  func.func @transform_10(%arg0: i32) -> (i32, i32) {
    %c0_i32 = arith.constant 0 : i32
    %c0_i32_0 = arith.constant 0 : i32
    %c0_i32_1 = arith.constant 0 : i32
    return %c0_i32, %c0_i32_0 : i32, i32
  }
  func.func @transform_11(%arg0: i32) -> (i32, i32) {
    %c0_i32 = arith.constant 0 : i32
    %c0_i32_0 = arith.constant 0 : i32
    %c0_i32_1 = arith.constant 0 : i32
    return %c0_i32, %c0_i32_0 : i32, i32
  }
  func.func @transform_12(%arg0: i32) -> (i32, i32) {
    %c0_i32 = arith.constant 0 : i32
    %c0_i32_0 = arith.constant 0 : i32
    %c0_i32_1 = arith.constant 0 : i32
    return %c0_i32, %c0_i32_0 : i32, i32
  }
  func.func @transform_13(%arg0: i32) -> (i32, i32) {
    %c0_i32 = arith.constant 0 : i32
    %c0_i32_0 = arith.constant 0 : i32
    %c0_i32_1 = arith.constant 0 : i32
    return %c0_i32, %c0_i32_0 : i32, i32
  }
  func.func @transform_14(%arg0: i32) -> (i32, i32) {
    %c0_i32 = arith.constant 0 : i32
    %c0_i32_0 = arith.constant 0 : i32
    %c0_i32_1 = arith.constant 0 : i32
    return %c0_i32, %c0_i32_0 : i32, i32
  }
  func.func @transform_15(%arg0: i32) -> (i32, i32) {
    %c0_i32 = arith.constant 0 : i32
    %c0_i32_0 = arith.constant 0 : i32
    %c0_i32_1 = arith.constant 0 : i32
    return %c0_i32, %c0_i32_0 : i32, i32
  }
  func.func @transform_16(%arg0: i32) -> (i32, i32) {
    %c0_i32 = arith.constant 0 : i32
    %c0_i32_0 = arith.constant 0 : i32
    %c0_i32_1 = arith.constant 0 : i32
    return %c0_i32, %c0_i32_0 : i32, i32
  }
  func.func @transform_17(%arg0: i32) -> (i32, i32) {
    %c0_i32 = arith.constant 0 : i32
    %c0_i32_0 = arith.constant 0 : i32
    %c0_i32_1 = arith.constant 0 : i32
    return %c0_i32, %c0_i32_0 : i32, i32
  }
  func.func @transform_18(%arg0: i32) -> (i32, i32) {
    %c0_i32 = arith.constant 0 : i32
    %c0_i32_0 = arith.constant 0 : i32
    %c0_i32_1 = arith.constant 0 : i32
    return %c0_i32, %c0_i32_0 : i32, i32
  }
  func.func @transform_19(%arg0: i32) -> (i32, i32) {
    %c0_i32 = arith.constant 0 : i32
    %c0_i32_0 = arith.constant 0 : i32
    %c0_i32_1 = arith.constant 0 : i32
    return %c0_i32, %c0_i32_0 : i32, i32
  }
  func.func @transform_20(%arg0: i32) -> (i32, i32) {
    %c0_i32 = arith.constant 0 : i32
    %c0_i32_0 = arith.constant 0 : i32
    %c0_i32_1 = arith.constant 0 : i32
    return %c0_i32, %c0_i32_0 : i32, i32
  }
  func.func @transform_21(%arg0: i32) -> (i32, i32) {
    %c0_i32 = arith.constant 0 : i32
    %c0_i32_0 = arith.constant 0 : i32
    %c0_i32_1 = arith.constant 0 : i32
    return %c0_i32, %c0_i32_0 : i32, i32
  }
  func.func @transform_22(%arg0: i32) -> (i32, i32) {
    %c0_i32 = arith.constant 0 : i32
    %c0_i32_0 = arith.constant 0 : i32
    %c0_i32_1 = arith.constant 0 : i32
    return %c0_i32, %c0_i32_0 : i32, i32
  }
  func.func @transform_23(%arg0: i32) -> (i32, i32) {
    %c0_i32 = arith.constant 0 : i32
    %c0_i32_0 = arith.constant 0 : i32
    %c0_i32_1 = arith.constant 0 : i32
    return %c0_i32, %c0_i32_0 : i32, i32
  }
  func.func @transform_24(%arg0: i32) -> (i32, i32) {
    %c0_i32 = arith.constant 0 : i32
    %c0_i32_0 = arith.constant 0 : i32
    %c0_i32_1 = arith.constant 0 : i32
    return %c0_i32, %c0_i32_0 : i32, i32
  }
  func.func @transform_25(%arg0: i32) -> (i32, i32) {
    %c0_i32 = arith.constant 0 : i32
    %c0_i32_0 = arith.constant 0 : i32
    %c0_i32_1 = arith.constant 0 : i32
    return %c0_i32, %c0_i32_0 : i32, i32
  }
  func.func @transform_26(%arg0: i32) -> (i32, i32) {
    %c0_i32 = arith.constant 0 : i32
    %c0_i32_0 = arith.constant 0 : i32
    %c0_i32_1 = arith.constant 0 : i32
    return %c0_i32, %c0_i32_0 : i32, i32
  }
  func.func @transform_27(%arg0: i32) -> (i32, i32) {
    %c0_i32 = arith.constant 0 : i32
    %c0_i32_0 = arith.constant 0 : i32
    %c0_i32_1 = arith.constant 0 : i32
    return %c0_i32, %c0_i32_0 : i32, i32
  }
  func.func @transform_28(%arg0: i32) -> (i32, i32) {
    %c0_i32 = arith.constant 0 : i32
    %c0_i32_0 = arith.constant 0 : i32
    %c0_i32_1 = arith.constant 0 : i32
    return %c0_i32, %c0_i32_0 : i32, i32
  }
  func.func @transform_29(%arg0: i32) -> (i32, i32) {
    %c0_i32 = arith.constant 0 : i32
    %c0_i32_0 = arith.constant 0 : i32
    %c0_i32_1 = arith.constant 0 : i32
    return %c0_i32, %c0_i32_0 : i32, i32
  }
  func.func @transform_30(%arg0: i32) -> (i32, i32, i32) {
    %c0_i32 = arith.constant 0 : i32
    %c0_i32_0 = arith.constant 0 : i32
    %c0_i32_1 = arith.constant 0 : i32
    return %arg0, %c0_i32, %c0_i32_0 : i32, i32, i32
  }
  func.func @transform_31(%arg0: i32) -> (i32, i32, i32) {
    %c0_i32 = arith.constant 0 : i32
    %c0_i32_0 = arith.constant 0 : i32
    %c0_i32_1 = arith.constant 0 : i32
    return %arg0, %c0_i32, %c0_i32_0 : i32, i32, i32
  }
}

</mosaic_0001>

<bundles_post_ra>
// kernel: _fused_forward.1
= control target key start
LH: loop header
LB: loop body
LE: loop exit
PB: predicated region body
PF: predicated region fallthrough
CT: control target
= control target key end

     0   :  { %s4918_s6 = smov 1   ;;  %s4919_s10 = smov 2   ;;  %s5755_s0 = inlined_call_operand.smem [shape: u32[32], index: -1, kind: input, shape index: {}] }
   0x1   :  { %s4968_s5 = sld [smem:[%s5755_s0]]   ;;  %s4920_s14 = smov 3  }
   0x2   :  { %s4973_s9 = sld [smem:[%s5755_s0 + %s4918_s6]]   ;;  %s4921_s18 = smov 4  }
   0x3   :  { %s4978_s13 = sld [smem:[%s5755_s0 + %s4919_s10]]   ;;  %s4922_s22 = smov 5  }
   0x4   :  { %s4983_s17 = sld [smem:[%s5755_s0 + %s4920_s14]]   ;;  %s4923_s26 = smov 6  }
   0x5   :  { %s4988_s21 = sld [smem:[%s5755_s0 + %s4921_s18]]   ;;  %s4924_s30 = smov 7  }
   0x6   :  { %s4993_s25 = sld [smem:[%s5755_s0 + %s4922_s22]]   ;;  %s4925_s4 = smov 8  }
   0x7   :  { %s4998_s29 = sld [smem:[%s5755_s0 + %s4923_s26]]   ;;  %s4926_s10 = smov 9  }
   0x8   :  { %5766 = sst [smem:[#allocation19_spill]] %s4973_s9  ;;  %s4927_s15 = smov 10  }
   0x9   :  { %s5003_s3 = sld [smem:[%s5755_s0 + %s4924_s30]]   ;;  %s4928_s20 = smov 11  }
   0xa   :  { %s5008_s8 = sld [smem:[%s5755_s0 + %s4925_s4]]   ;;  %s4929_s26 = smov 12  }
   0xb   :  { %s5013_s14 = sld [smem:[%s5755_s0 + %s4926_s10]]   ;;  %s4930_s1 = smov 13  }
   0xc   :  { %5767 = sst [smem:[#allocation20_spill]] %s4993_s25  ;;  %s4931_s7 = smov 14  }
   0xd   :  { %s5018_s19 = sld [smem:[%s5755_s0 + %s4927_s15]]   ;;  %s4932_s15 = smov 15  }
   0xe   :  { %s5023_s24 = sld [smem:[%s5755_s0 + %s4928_s20]]   ;;  %s4933_s22 = smov 16  }
   0xf   :  { %5768 = sst [smem:[#allocation21_spill]] %s5003_s3  ;;  %s4934_s28 = smov 17  }
  0x10   :  { %s5028_s30 = sld [smem:[%s5755_s0 + %s4929_s26]]   ;;  %s4943_s10 = smov 26  }
  0x11   :  { %5769 = sst [smem:[#allocation22_spill]] %s5013_s14  ;;  %s4944_s16 = smov 27  }
  0x12   :  { %s5033_s6 = sld [smem:[%s5755_s0 + %s4930_s1]]   ;;  %s4945_s23 = smov 28  }
  0x13   :  { %5770 = sst [smem:[#allocation23_spill]] %s5018_s19  ;;  %s4946_s1 = smov 30  }
  0x14   :  { %5771 = sst [smem:[#allocation24_spill]] %s5023_s24 }
  0x15   :  { %s5038_s12 = sld [smem:[%s5755_s0 + %s4931_s7]]   ;;  %s4935_s7 = smov 18  }
  0x16   :  { %s5043_s20 = sld [smem:[%s5755_s0 + %s4932_s15]]   ;;  %s4936_s15 = smov 19  }
  0x17   :  { %s5048_s27 = sld [smem:[%s5755_s0 + %s4933_s22]]   ;;  %s4937_s22 = smov 20  }
  0x18   :  { %s5053_s4 = sld [smem:[%s5755_s0 + %s4934_s28]]   ;;  %s4938_s28 = smov 21  }
  0x19   :  { %s5063_s14 = sld [smem:[%s5755_s0 + %s4936_s15]]   ;;  %s4940_s15 = smov 23  }
  0x1a   :  { %s5068_s3 = sld [smem:[%s5755_s0 + %s4937_s22]]   ;;  %s4941_s22 = smov 24  }
  0x1b   :  { %5772 = sst [smem:[#allocation25_spill]] %s5038_s12 }
  0x1c   :  { %s5058_s12 = sld [smem:[%s5755_s0 + %s4935_s7]]   ;;  %s4939_s7 = smov 22  }
  0x1d   :  { %s5073_s19 = sld [smem:[%s5755_s0 + %s4938_s28]]   ;;  %s4942_s28 = smov 25  }
  0x1e   :  { %s5078_s25 = sld [smem:[%s5755_s0 + %s4939_s7]]  }
  0x1f   :  { %5773 = sst [smem:[#allocation26_spill]] %s5063_s14 }
  0x20   :  { %5774 = sst [smem:[#allocation27_spill]] %s5068_s3 }
  0x21   :  { %s5083_s14 = sld [smem:[%s5755_s0 + %s4940_s15]]  }
  0x22   :  { %s5088_s3 = sld [smem:[%s5755_s0 + %s4941_s22]]  }
  0x23   :  { %s4013_s24 = sld [smem:[%s5755_s0 + %s4942_s28]]  }
  0x24   :  { %5775 = sst [smem:[#allocation28_spill]] %s5078_s25 }
  0x25   :  { %s5096_s25 = sld [smem:[%s5755_s0 + %s4943_s10]]   ;;  %s4947_s10 = smov 31  }
  0x26   :  { %s5111_s9 = sld [smem:[%s5755_s0 + %s4946_s1]]  }
  0x27   :  { %5776 = sst [smem:[#allocation29_spill]] %s5083_s14 }
  0x28   :  { %5777 = sst [smem:[#allocation30_spill]] %s5088_s3 }
  0x29   :  { %s5101_s14 = sld [smem:[%s5755_s0 + %s4944_s16]]   ;;  %v69_v0 = vstv %s4013_s24  ;;  %s4948_s16 = smov 29  }
  0x2a   :  { %s5106_s3 = sld [smem:[%s5755_s0 + %s4945_s23]]   ;;  %70 = vst [vmem:[#allocation2] sm:$0x1] %v69_v0 }
  0x2b   :  { %5778 = sst [smem:[#allocation31_spill]] %s5096_s25 }
  0x2c   :  { %s5116_s25 = sld [smem:[%s5755_s0 + %s4947_s10]]  }
  0x2d   :  { %s4017_s22 = sld [smem:[%s5755_s0 + %s4948_s16]]  }
  0x33   :  { %v71_v1 = vstv %s4017_s22 }
  0x34   :  { %72 = vst [vmem:[#allocation3] sm:$0x1] %v71_v1 }
  0x35   :  { %73 = vsyncpa [#allocation5], 0 }
  0x36   :  { %74 = vsyncpa [#allocation7], 0 }
  0x37   :  { %75 = vsyncpa [#allocation10], 0 }
  0x38   :  { %76 = vsyncpa [#allocation13], 0  ;;  %s5121_s23 = smov 0  }
  0x39 LB: > { %s4949_s24 = smov [#allocation6]   ;;  %s5127_s0 = sadd.s32 4294967295, %s4916_s23   ;;  %s4916_s23 = sphi %s5121_s23, %s82_s23  }
  0x3a   : > { %s839_s26 = sshll.u32 %s4949_s24, 4  ;;  %p4022_p0 = scmp.ge.s32.totalorder %s4916_s23, 1  ;;  %s840_s26 = int_to_ptr.vmem [resolvable:$true] %s839_s26 }
  0x3b   : > { %p789_p1 = scmp.lt.s32.totalorder %s4916_s23, 3  ;;  %p5765_p2 = scmp.eq.s32.totalorder %s5127_s0, 0 }
  0x3c   : > { %s4950_s28 = smov [#allocation9]   ;;  %s4951_s7 = smov [#allocation12]  }
  0x3d   : > { %p5132_p3 = pnand %p4022_p0, %p789_p1  ;;  %s865_s2 = sshll.u32 %s4950_s28, 4  ;;  %s5138_s2 = int_to_ptr.vmem [resolvable:$true] %s865_s2 }
  0x3e   : > { %s889_s11 = sshll.u32 %s4951_s7, 4  ;;  %s4952_s16 = smov [#allocation4]   ;;  %s5146_s11 = int_to_ptr.vmem [resolvable:$true] %s889_s11 }
  0x3f   : > { %p4626_p4 = pneg %p5132_p3  ;;  %s5148_s15 = sshll.u32 %s4952_s16, 4  ;;  %s826_s15 = int_to_ptr.vmem [resolvable:$true] %s5148_s15 }
  0x40   : > { %s4723_s22 = scalar_lea.vmem %s840_s26, 16  ;;  %s4730_s24 = scalar_lea.vmem %s840_s26, 32 }
  0x41   : > { %p5142_p5 = pnand %p5765_p2, %p4626_p4  ;;  %p4724_p7 = scmp.ne.s32.totalorder %s840_s26, %s4723_s22 }
  0x42   : > { %p4731_p10 = scmp.lt.s32.totalorder %s840_s26, %s840_s26  ;;  %p4732_p11 = scmp.lt.s32.totalorder %s4730_s24, %s4723_s22 }
  0x43   : > { %p5152_p6 = pneg %p5142_p5 }
  0x44   : > { %p4733_p12 = por %p4732_p11, %p4731_p10 }
  0x45   : > { %p4726_p8 = pnand %p4724_p7, %p5152_p6 }
  0x47   : > { %p4727_p9 = pneg %p4726_p8 }
  0x49   : > { %p4734_p13 = pnand %p4733_p12, %p4727_p9 }
  0x4b   : > { %4737 = shalt.err (!%p4734_p13)
}
  0x4c   : > { %4632 = dma.hbm_to_vmem [thread:$0]  (!%p5142_p5), %s5033_s6, 16, %s840_s26, [#allocation7]  }
  0x4d   : > { %s4749_s28 = scalar_lea.vmem %s5138_s2, 256  ;;  %p4757_p7 = scmp.lt.s32.totalorder %s5138_s2, %s5138_s2 }
  0x4e   : > { %p4750_p0 = scmp.ne.s32.totalorder %s5138_s2, %s4749_s28  ;;  %p4758_p8 = scmp.lt.s32.totalorder %s4749_s28, %s4749_s28 }
  0x50   : > { %p4752_p1 = pnand %p4750_p0, %p5152_p6  ;;  %p4759_p2 = por %p4758_p8, %p4757_p7 }
  0x52   : > { %p4753_p4 = pneg %p4752_p1 }
  0x54   : > { %p4760_p10 = pnand %p4759_p2, %p4753_p4 }
  0x56   : > { %4763 = shalt.err (!%p4760_p10)
}
  0x57   : > { %s4953_s7 = smov 128   ;;  %s4954_s26 = smov 8  }
  0x58   : > { %4638 = dma.hbm_to_vmem [thread:$0]  (!%p5142_p5), %s5048_s27, 256, %s5138_s2, [#allocation10], %s4953_s7, %s4953_s7, %s4954_s26  }
  0x59   : > { %s4775_s16 = scalar_lea.vmem %s5146_s11, 256  ;;  %p4783_p12 = scmp.lt.s32.totalorder %s5146_s11, %s5146_s11 }
  0x5a   : > { %p4776_p9 = scmp.ne.s32.totalorder %s5146_s11, %s4775_s16  ;;  %p4784_p13 = scmp.lt.s32.totalorder %s4775_s16, %s4775_s16 }
  0x5c   : > { %p4778_p11 = pnand %p4776_p9, %p5152_p6  ;;  %p4785_p0 = por %p4784_p13, %p4783_p12 }
  0x5e   : > { %p4779_p2 = pneg %p4778_p11 }
  0x60   : > { %p4786_p1 = pnand %p4785_p0, %p4779_p2 }
  0x62   : > { %4789 = shalt.err (!%p4786_p1)
}
  0x63   : > { %4644 = dma.hbm_to_vmem [thread:$0]  (!%p5142_p5), %s5058_s12, 256, %s5146_s11, [#allocation13], %s4953_s7, %s4953_s7, %s4954_s26  }
  0x64   : > { %s4801_s2 = scalar_lea.vmem %s826_s15, 256  ;;  %p4809_p10 = scmp.lt.s32.totalorder %s826_s15, %s826_s15 }
  0x65   : > { %p4802_p4 = scmp.ne.s32.totalorder %s826_s15, %s4801_s2  ;;  %p4810_p9 = scmp.lt.s32.totalorder %s4801_s2, %s4801_s2 }
  0x67   : > { %p4804_p7 = pnand %p4802_p4, %p5152_p6  ;;  %p4811_p11 = por %p4810_p9, %p4809_p10 }
  0x69   : > { %p4805_p8 = pneg %p4804_p7 }
  0x6b   : > { %p4812_p2 = pnand %p4811_p11, %p4805_p8 }
  0x6d   : > { %4815 = shalt.err (!%p4812_p2)
}
  0x6e   : > { %4629 = dma.hbm_to_vmem [thread:$0]  (!%p5142_p5), %s5028_s30, 256, %s826_s15, [#allocation5], %s4953_s7, %s4953_s7, %s4954_s26  }
  0x6f   : > { %s4955_s11 = smov [#allocation8]   ;;  %s4956_s24 = smov [#allocation11]  }
  0x70   : > { %s852_s22 = sshll.u32 %s4955_s11, 4  ;;  %s879_s28 = sshll.u32 %s4956_s24, 4  ;;  %s853_s22 = int_to_ptr.vmem [resolvable:$true] %s852_s22  ;;  %s880_s28 = int_to_ptr.vmem [resolvable:$true] %s879_s28 }
  0x71   : > { %s4827_s16 = scalar_lea.vmem %s853_s22, 512  ;;  %p4835_p1 = scmp.lt.s32.totalorder %s853_s22, %s853_s22 }
  0x72   : > { %p4828_p12 = scmp.ne.s32.totalorder %s853_s22, %s4827_s16  ;;  %p4836_p4 = scmp.lt.s32.totalorder %s4827_s16, %s4827_s16 }
  0x74   : > { %p4830_p13 = pnand %p4828_p12, %p5152_p6  ;;  %p4837_p7 = por %p4836_p4, %p4835_p1 }
  0x76   : > { %p4831_p0 = pneg %p4830_p13 }
  0x78   : > { %p4838_p8 = pnand %p4837_p7, %p4831_p0 }
  0x7a   : > { %4841 = shalt.err (!%p4838_p8)
}
  0x7b   : > { %4635 = dma.hbm_to_vmem [thread:$0]  (!%p5142_p5), %s5043_s20, 512, %s853_s22, [#allocation7], %s4953_s7, %s4953_s7, %s4954_s26  }
  0x7c   : > { %s4853_s15 = scalar_lea.vmem %s880_s28, 16  ;;  %s4860_s2 = scalar_lea.vmem %s880_s28, 32 }
  0x7d   : > { %p4854_p10 = scmp.ne.s32.totalorder %s880_s28, %s4853_s15  ;;  %p4861_p2 = scmp.lt.s32.totalorder %s880_s28, %s880_s28 }
  0x7e   : > { %p4862_p12 = scmp.lt.s32.totalorder %s4860_s2, %s4853_s15 }
  0x7f   : > { %p4856_p9 = pnand %p4854_p10, %p5152_p6 }
  0x80   : > { %p4863_p13 = por %p4862_p12, %p4861_p2 }
  0x81   : > { %p4857_p11 = pneg %p4856_p9 }
  0x83   : > { %p4864_p0 = pnand %p4863_p13, %p4857_p11 }
  0x85   : > { %4867 = shalt.err (!%p4864_p0)
}
  0x86   : > { %4641 = dma.hbm_to_vmem [thread:$0]  (!%p5142_p5), %s5053_s4, 16, %s880_s28, [#allocation10]  }
  0x87   : > { %s4957_s11 = smov [#allocation14]  }
  0x88   : > { %s909_s24 = sshll.u32 %s4957_s11, 4  ;;  %s910_s24 = int_to_ptr.vmem [resolvable:$true] %s909_s24 }
  0x89   : > { %s4879_s7 = scalar_lea.vmem %s910_s24, 16  ;;  %s4886_s26 = scalar_lea.vmem %s910_s24, 32 }
  0x8a   : > { %p4880_p1 = scmp.ne.s32.totalorder %s910_s24, %s4879_s7  ;;  %p4887_p8 = scmp.lt.s32.totalorder %s910_s24, %s910_s24 }
  0x8b   : > { %p4888_p10 = scmp.lt.s32.totalorder %s4886_s26, %s4879_s7 }
  0x8c   : > { %p4882_p4 = pnand %p4880_p1, %p5152_p6 }
  0x8d   : > { %p4889_p9 = por %p4888_p10, %p4887_p8 }
  0x8e   : > { %p4883_p7 = pneg %p4882_p4 }
  0x90   : > { %p4890_p2 = pnand %p4889_p9, %p4883_p7 }
  0x92   : > { %4893 = shalt.err (!%p4890_p2)
}
  0x93   : > { %4647 = dma.hbm_to_vmem [thread:$0]  (!%p5142_p5), %s5073_s19, 16, %s910_s24, [#allocation13]  }
  0x94   : > { %976 = sbr.rel (%p5132_p3) target bundleno = 2450 (0x992), region = 140  ;;  %p5782_p11 = scmp.eq.s32.totalorder (!%p5132_p3), %s5127_s0, 0 }
  0x99   : > { %4899 = dma.done.wait (%p5782_p11), [#allocation5], 256   ;;  %p5783_p12 = pmov %p5782_p11 }
  0x9a   : > { %p5784_p6 = pmov %p5782_p11 }
  0x9b   : > { %4901 = vsyncadd (%p5783_p12), [#allocation5], 4294967040 }
  0x9c   : > { %4903 = dma.done.wait (%p5784_p6), [#allocation7], 528   ;;  %p5785_p13 = pmov %p5784_p6 }
  0x9d   : > { %p5786_p0 = pmov %p5784_p6 }
  0x9e   : > { %4905 = vsyncadd (%p5785_p13), [#allocation7], 4294966768 }
  0x9f   : > { %4907 = dma.done.wait (%p5786_p0), [#allocation10], 272   ;;  %p5787_p5 = pmov %p5786_p0 }
  0xa0   : > { %p5788_p3 = pmov %p5786_p0 }
  0xa1   : > { %4909 = vsyncadd (%p5787_p5), [#allocation10], 4294967024 }
  0xa2   : > { %4911 = dma.done.wait (%p5788_p3), [#allocation13], 272   ;;  %p5789_p1 = pmov %p5786_p0 }
  0xa3   : > { %p1096_p4 = scmp.lt.s32.totalorder %s5127_s0, 1  ;;  %v4958_v2 = vmov 0.0   ;;  %vm4959_vm0 = vmmov 0   ;;  %vm1141_vm1 = vcmask 261120   ;;  %v1133_v3 = vld [vmem:[%s4988_s21 + $0x18] sm:$0xff]  ;;  %v1132_v4 = vld [vmem:[%s4988_s21 + $0x10] sm:$0xff] }
  0xa4   : > { %4913 = vsyncadd (%p5789_p1), [#allocation13], 4294967024  ;;  %4273 = vmatprep.subr.mxu1 %v4958_v2  ;;  %4281 = vmatprep.mubr.msk.f32.mxu1 %vm4959_vm0, %v4958_v2  ;;  %v1131_v6 = vld [vmem:[%s4988_s21 + $0x8] sm:$0xff]  ;;  %v1226_v8 = vld [vmem:[%s4998_s29 + $0x18] sm:$0xff]  ;;  %s5790_s22 = sld [smem:[#allocation19_spill]]  ;;  %vm1326_vm2 = vcmask 130048  }
  0xa5   : > { %s5804_s0 = smov (!%p1096_p4, %s5127_s0), 1  ;;  %4262 = vmatprep.subr.mxu0 %v1133_v3  ;;  %v1225_v9 = vld [vmem:[%s4998_s29 + $0x10] sm:$0xff]  ;;  %v1130_v10 = vld [vmem:[%s4988_s21] sm:$0xff]  ;;  %4274 = vmatpush3.msra.mxu1 %v1226_v8  ;;  %v1324_v13 = vld [vmem:[%s5008_s8 + $0x8] sm:$0xff]  ;;  %s5791_s15 = sld [smem:[#allocation24_spill]]  ;;  %vm1808_vm3 = vcmask 195584  }
  0xa6   : > { %s5240_s1 = sshll.u32 %s5804_s0, 4  ;;  %4263 = vmatpush3.msra.mxu0 %v1133_v3  ;;  %4275 = vmatprep.subr.mxu1 %v4958_v2  ;;  %v1323_v14 = vld [vmem:[%s5008_s8] sm:$0xff]  ;;  %s1108_s28 = scalar_lea.vmem %s4978_s13, %s5804_s0  ;;  %v1224_v16 = vld [vmem:[%s4998_s29 + $0x8] sm:$0xff] }
  0xa7   : > { %s1100_s10 = scalar_lea.vmem %s4968_s5, %s5240_s1  ;;  %s1113_s18 = scalar_lea.vmem %s4983_s17, %s5240_s1  ;;  %4264 = vmatprep.subr.mxu0 %v1132_v4  ;;  %4276 = vmatpush3.msra.mxu1 %v1225_v9  ;;  %v1127_v15 = vld [vmem:[%s1108_s28] sm:$0x1]  ;;  %v5363_v49 = vld [vmem:[#allocation4 + $0x8] sm:$0xff]  ;;  %v5366_v51 = vld [vmem:[#allocation4] sm:$0xff] }
  0xa8   : > { %v1122_v5 = vld [vmem:[%s1100_s10] sm:$0xff]  ;;  %4265 = vmatpush3.msra.mxu0 %v1132_v4  ;;  %v5256_v11 = vld [vmem:[%s1113_s18 + $0x8] sm:$0xff]  ;;  %4277 = vmatprep.subr.mxu1 %v4958_v2  ;;  %s4597_s16 = smul.u32 24, %s5804_s0  ;;  %s5792_s11 = sld [smem:[#allocation20_spill]] }
  0xa9   : > { %4270 = vmatprep.mubr.msk.f32.mxu0 %vm1141_vm1, %v1122_v5  ;;  %v5250_v7 = vld [vmem:[%s1113_s18] sm:$0xff]  ;;  %4266 = vmatprep.subr.mxu0 %v1131_v6  ;;  %v1123_v12 = vld [vmem:[%s1100_s10 + $0x8] sm:$0xff]  ;;  %s5793_s24 = sld [smem:[#allocation23_spill]]  ;;  %v1782_v5 = vlaneseq }
  0xaa   : > { %1400 = vxpose.xlu0.b32.start [1/2] (short) (narrow) %v5250_v7, 24  ;;  %4267 = vmatpush3.msra.mxu0 %v1131_v6  ;;  %v1223_v17 = vld [vmem:[%s4998_s29] sm:$0xff]  ;;  %s1105_s2 = scalar_lea.vmem %s5790_s22, %s4597_s16  ;;  %s5794_s7 = sld [smem:[#allocation21_spill]]  ;;  %v5386_v1 = vld [vmem:[#allocation8 + $0x18] sm:$0xff] }
  0xab   : > { %4268 = vmatprep.subr.mxu0 %v1130_v10  ;;  %4278 = vmatpush3.msra.mxu1 %v1224_v16  ;;  %v1124_v18 = vld [vmem:[%s1105_s2] sm:$0xff]  ;;  %v1125_v19 = vld [vmem:[%s1105_s2 + $0x8] sm:$0xff]  ;;  %v1126_v20 = vld [vmem:[%s1105_s2 + $0x10] sm:$0xff]  ;;  %s5795_s26 = sld [smem:[#allocation22_spill]]  ;;  %v1783_v9 = vshrl.u32 %v1782_v5, 7 }
  0xac   : > { %4269 = vmatpush3.msra.mxu0 %v1130_v10  ;;  %4279 = vmatprep.subr.mxu1 %v4958_v2  ;;  %v5290_v21 = vld [vmem:[%s5791_s15 + $0x18] sm:$0xff]  ;;  %v5294_v22 = vld [vmem:[%s5791_s15 + $0x10] sm:$0xff]  ;;  %v5300_v23 = vld [vmem:[%s5791_s15 + $0x8] sm:$0xff]  ;;  %s5796_s10 = sld [smem:[#allocation25_spill]] }
  0xad   : > { %4271 = vmatmul.mubr.msk.f32.vlgmr.msra.gmra.mxu0 %vm1141_vm1, %v1123_v12  ;;  %4290 = vmatprep.subr.mxu0 %v4958_v2  ;;  %v5348_v40 = vld [vmem:[%s5791_s15] sm:$0xff]  ;;  %s5797_s18 = sld [smem:[#allocation27_spill]] }
  0xae   : > { %1401 = vxpose.xlu0.b32.end [2/2] (short) (narrow) %v5256_v11, 24  ;;  %4291 = vmatpush3.msra.mxu0 %v1324_v13  ;;  %v4046_v24 = vld [vmem:[%s5792_s11] ss:$0 sm:$0xff]  ;;  %v5388_v3 = vld [vmem:[#allocation8 + $0x10] sm:$0xff]  ;;  %v5394_v13 = vsub.s32 0, %v1783_v9  ;;  %s5798_s22 = sld [smem:[#allocation26_spill]] }
  0xaf   : > { %4294 = vmatprep.mubr.msk.f32.mxu0 %vm4959_vm0, %v4958_v2  ;;  %4292 = vmatprep.subr.mxu0 %v4958_v2  ;;  %v5314_v30 = vld [vmem:[%s5793_s24 + $0x18] sm:$0xff]  ;;  %v5323_v32 = vld [vmem:[%s5793_s24 + $0x10] sm:$0xff]  ;;  %v5330_v33 = vld [vmem:[%s5793_s24 + $0x8] sm:$0xff]  ;;  %s5799_s28 = sld [smem:[#allocation28_spill]] }
  0xb0   : > { %4293 = vmatpush3.msra.mxu0 %v1323_v14  ;;  %4280 = vmatpush3.msra.mxu1 %v1223_v17  ;;  %v4049_v37 = vld [vmem:[%s5794_s7] ss:$0 sm:$0xff]  ;;  %s5800_s16 = sld [smem:[#allocation31_spill]]  ;;  %s1118_s7 = scalar_lea.vmem %s5111_s9, %s5240_s1 }
  0xb1   : > { %4297 = vmatprep.subr.mxu0 %v4958_v2  ;;  %4295 = vmatmul.mubr.msk.f32.vlgmr.msra.gmra.mxu0 %vm1326_vm2, %v1127_v15  ;;  %v5351_v41 = vld [vmem:[%s5793_s24] sm:$0xff]  ;;  %s5801_s2 = sld [smem:[#allocation29_spill]] }
  0xb2   : > { %4301 = vmatprep.mubr.msk.f32.mxu0 %vm4959_vm0, %v4958_v2  ;;  %4282 = vmatmul.mubr.msk.f32.vlgmr.msra.gmra.mxu1 %vm1141_vm1, %v1124_v18  ;;  %v1325_v55 = vld [vmem:[%s5795_s26] sm:$0x1]  ;;  %s5802_s11 = sld [smem:[#allocation30_spill]]  ;;  %s1121_s26 = scalar_lea.vmem %s5116_s25, %s5804_s0 }
  0xb3   : > { %4310 = vmatprep.subr.mxu1 %v4958_v2  ;;  %4284 = vmatprep.mubr.msk.f32.mxu1 %vm4959_vm0, %v4958_v2  ;;  %v5492_v9 = vld [vmem:[#allocation8 + $0x8] sm:$0xff] }
  0xb4   : > { %4311 = vmatpush3.msra.mxu1 %v5290_v21 }
  0xb5   : > { %4312 = vmatprep.subr.mxu1 %v4958_v2 }
  0xb6   : > { %4285 = vmatmul.mubr.msk.f32.gmra.mxu1 %vm1141_vm1, %v1125_v19 }
  0xb7   : > { %4287 = vmatprep.mubr.msk.f32.mxu1 %vm4959_vm0, %v4958_v2  ;;  %4313 = vmatpush3.msra.mxu1 %v5294_v22 }
  0xb8   : > { %4314 = vmatprep.subr.mxu1 %v4958_v2 }
  0xb9   : > { %4315 = vmatpush3.msra.mxu1 %v5300_v23 }
  0xba   : > { %4288 = vmatmul.mubr.msk.f32.gmra.mxu1 %vm1141_vm1, %v1126_v20  ;;  %4316 = vmatprep.subr.mxu1 %v4958_v2  ;;  %v5397_v20 = vld [vmem:[#allocation6] ss:$0 sm:$0xff] }
  0xbb   : > { %4318 = vmatprep.mubr.msk.f32.mxu1 %vm4959_vm0, %v4958_v2  ;;  %4317 = vmatpush3.msra.mxu1 %v5348_v40 }
  0xbc   : > { %4344 = vmatprep.subr.mxu1 %v4958_v2 }
 0x126   : > { %v5305_v25 = vpop.trf.xlu0 }
 0x12a   : > { %v5317_v31 = vpop.trf.xlu0 }
 0x12e   : > { %v5336_v34 = vpop.trf.xlu0 }
 0x16d   : > { %v4272_v26 = vpop.f32.mrf.mxu0 }
 0x16e   : > { %v5307_v27 = vadd.f32 %v4272_v26, %v4046_v24 }
 0x16f   : > { %v1214_v28 = vpop.f32.mrf.mxu0 }
 0x170   : > { %v5309_v29 = vadd.f32 %v4046_v24, %v1214_v28  ;;  %4298 = vmatpush3.msra.mxu0 %v5307_v27 }
 0x171   : > { %4299 = vmatprep.subr.mxu0 %v4958_v2  ;;  %v1396_v35 = vpop.f32.mrf.mxu0 }
 0x172   : > { %4300 = vmatpush3.msra.mxu0 %v5309_v29  ;;  %v1309_v38 = vpop.f32.mrf.mxu1  ;;  %v5380_v58 = vadd.f32 %v1396_v35, %v1325_v55  ;;  %v5424_v55 = vld [vmem:[%s5796_s10 + $0x10] sm:$0xff] }
 0x173   : > { %4302 = vmatmul.mubr.msk.f32.vlgmr.msra.gmra.mxu0 %vm1326_vm2, %v5305_v25  ;;  %4327 = vmatprep.subr.mxu0 %v4958_v2  ;;  %v4296_v36 = vpop.f32.mrf.mxu0  ;;  %v1310_v39 = vadd.f32 %v4049_v37, %v1309_v38 }
 0x174   : > { %4304 = vmatprep.mubr.msk.f32.mxu0 %vm4959_vm0, %v4958_v2  ;;  %4328 = vmatpush3.msra.mxu0 %v5314_v30  ;;  %v4283_v42 = vpop.f32.mrf.mxu1 }
 0x175   : > { %4329 = vmatprep.subr.mxu0 %v4958_v2 }
 0x176   : > { %4330 = vmatpush3.msra.mxu0 %v5323_v32  ;;  %v1314_v43 = vpop.f32.mrf.mxu1 }
 0x177   : > { %4305 = vmatmul.mubr.msk.f32.gmra.mxu0 %vm1326_vm2, %v5317_v31  ;;  %4331 = vmatprep.subr.mxu0 %v4958_v2  ;;  %v1315_v44 = vadd.f32 %v4049_v37, %v1314_v43 }
 0x178   : > { %4307 = vmatprep.mubr.msk.f32.mxu0 %vm4959_vm0, %v4958_v2  ;;  %4332 = vmatpush3.msra.mxu0 %v5330_v33  ;;  %v4286_v45 = vpop.f32.mrf.mxu1 }
 0x179   : > { %4333 = vmatprep.subr.mxu0 %v4958_v2 }
 0x17a   : > { %4334 = vmatpush3.msra.mxu0 %v5351_v41  ;;  %v1319_v46 = vpop.f32.mrf.mxu1 }
 0x17b   : > { %4308 = vmatmul.mubr.msk.f32.gmra.mxu0 %vm1326_vm2, %v5336_v34  ;;  %v1320_v47 = vadd.f32 %v4049_v37, %v1319_v46  ;;  %4360 = vmatprep.subr.mxu0 %v5386_v1 }
 0x17c   : > { %4335 = vmatprep.mubr.msk.f32.mxu0 %vm4959_vm0, %v4958_v2  ;;  %v4289_v48 = vpop.f32.mrf.mxu1 }
 0x17f   : > { %4336 = vmatmul.mubr.msk.f32.vlgmr.msra.gmra.mxu0 %vm1141_vm1, %v1310_v39 }
 0x180   : > { %4338 = vmatprep.mubr.msk.f32.mxu0 %vm4959_vm0, %v4958_v2  ;;  %4361 = vmatpush3.msra.mxu0 %v5386_v1 }
 0x181   : > { %4362 = vmatprep.subr.mxu0 %v5388_v3 }
 0x182   : > { %4363 = vmatpush3.msra.mxu0 %v5388_v3 }
 0x183   : > { %4339 = vmatmul.mubr.msk.f32.gmra.mxu0 %vm1141_vm1, %v1315_v44  ;;  %4364 = vmatprep.subr.mxu0 %v5492_v9 }
 0x184   : > { %4341 = vmatprep.mubr.msk.f32.mxu0 %vm4959_vm0, %v4958_v2  ;;  %4365 = vmatpush3.msra.mxu0 %v5492_v9 }
 0x187   : > { %4342 = vmatmul.mubr.msk.f32.gmra.mxu0 %vm1141_vm1, %v1320_v47 }
 0x233   : > { %v1507_v50 = vpop.f32.mrf.mxu0 }
 0x234   : > { %4319 = vmatmul.mubr.msk.f32.vlgmr.msra.gmra.mxu1 %vm1141_vm1, %v1507_v50 }
 0x235   : > { %v4303_v52 = vpop.f32.mrf.mxu0  ;;  %4321 = vmatprep.mubr.msk.f32.mxu1 %vm4959_vm0, %v4958_v2  ;;  %4345 = vmatpush3.msra.mxu1 %v5363_v49 }
 0x236   : > { %4346 = vmatprep.subr.mxu1 %v4958_v2 }
 0x237   : > { %v1512_v53 = vpop.f32.mrf.mxu0  ;;  %4347 = vmatpush3.msra.mxu1 %v5366_v51 }
 0x238   : > { %4322 = vmatmul.mubr.msk.f32.gmra.mxu1 %vm1141_vm1, %v1512_v53  ;;  %v5419_v53 = vld [vmem:[%s5796_s10 + $0x18] sm:$0xff] }
 0x239   : > { %v4306_v54 = vpop.f32.mrf.mxu0  ;;  %4324 = vmatprep.mubr.msk.f32.mxu1 %vm4959_vm0, %v4958_v2 }
 0x23b   : > { %v1517_v56 = vpop.f32.mrf.mxu0 }
 0x23c   : > { %4325 = vmatmul.mubr.msk.f32.gmra.mxu1 %vm1141_vm1, %v1517_v56 }
 0x23d   : > { %v4309_v57 = vpop.f32.mrf.mxu0  ;;  %4348 = vmatprep.mubr.msk.f32.mxu1 %vm4959_vm0, %v4958_v2 }
 0x23e   : > { %v5433_v57 = vld [vmem:[%s5796_s10 + $0x8] sm:$0xff] }
 0x23f   : > { %v1693_v59 = vpop.f32.mrf.mxu0 }
 0x240   : > { %4349 = vmatmul.mubr.msk.f32.vlgmr.msra.gmra.mxu1 %vm1326_vm2, %v5380_v58 }
 0x241   : > { %v4337_v60 = vpop.f32.mrf.mxu0  ;;  %4357 = vmatprep.mubr.msk.f32.mxu1 %vm1808_vm3, %v5250_v7 }
 0x242   : > { %v5438_v60 = vld [vmem:[%s5796_s10] sm:$0xff] }
 0x243   : > { %v1698_v61 = vpop.f32.mrf.mxu0 }
 0x245   : > { %v4340_v62 = vpop.f32.mrf.mxu0 }
 0x246   : > { %v5443_v62 = vld [vmem:[#allocation12 + $0x8] sm:$0xff] }
 0x247   : > { %v1703_v63 = vpop.f32.mrf.mxu0 }
 0x249   : > { %v4343_v0 = vpop.f32.mrf.mxu0 }
 0x2f4   : > { %v1604_v4 = vpop.f32.mrf.mxu1 }
 0x2f5   : > { %v1694_v16 = vadd.f32 %v1693_v59, %v1604_v4  ;;  %v5470_v4 = vld [vmem:[%s5797_s18 + $0x8] sm:$0xff] }
 0x2f6   : > { %v4320_v6 = vpop.f32.mrf.mxu1 }
 0x2f7   : > { %v5475_v6 = vld [vmem:[%s5797_s18] sm:$0xff] }
 0x2f8   : > { %v1609_v8 = vpop.f32.mrf.mxu1 }
 0x2f9   : > { %v1699_v17 = vadd.f32 %v1698_v61, %v1609_v8 }
 0x2fa   : > { %v4323_v10 = vpop.f32.mrf.mxu1 }
 0x2fb   : > { %v5501_v10 = vld [vmem:[#allocation9 + $0x8] sm:$0xff] }
 0x2fc   : > { %v1614_v12 = vpop.f32.mrf.mxu1 }
 0x2fd   : > { %v1704_v18 = vadd.f32 %v1703_v63, %v1614_v12  ;;  %v5456_v63 = vld [vmem:[%s5797_s18 + $0x18] sm:$0xff] }
 0x2fe   : > { %v4326_v14 = vpop.f32.mrf.mxu1 }
 0x300   : > { %v1778_v15 = vpop.f32.mrf.mxu1 }
 0x301   : > { %v1785_v19 = vrot.slane %v1778_v15, %v5394_v13 }
 0x302   : > { %v4350_v24 = vpop.f32.mrf.mxu1 }
 0x303   : > { %v1786_v26 = vadd.f32 %v1785_v19, %v1694_v16  ;;  %v1787_v28 = vadd.f32 %v1785_v19, %v1699_v17  ;;  %v1788_v35 = vadd.f32 %v1785_v19, %v1704_v18  ;;  %v5522_v19 = vld [vmem:[%s5798_s22 + $0x18] sm:$0xff]  ;;  %v5525_v24 = vld [vmem:[%s5798_s22 + $0x10] sm:$0xff] }
 0x305   : > { %v1796_v36 = vadd.f32 %v5397_v20, %v1786_v26  ;;  %v1797_v37 = vadd.f32 %v5397_v20, %v1787_v28  ;;  %v1798_v38 = vadd.f32 %v5397_v20, %v1788_v35  ;;  %v5535_v26 = vld [vmem:[%s5798_s22] sm:$0xff] }
 0x307   : > { %vm1801_vm4 = vcmp.gt.f32.partialorder %v1798_v38, 0.0  ;;  %v1804_v39 = vmul.f32 0.01, %v1798_v38  ;;  %vm1800_vm5 = vcmp.gt.f32.partialorder %v1797_v37, 0.0  ;;  %v1803_v42 = vmul.f32 0.01, %v1797_v37 }
 0x308   : > { %vm1799_vm6 = vcmp.gt.f32.partialorder %v1796_v36, 0.0  ;;  %v1802_v43 = vmul.f32 0.01, %v1796_v36 }
 0x309   : > { %v5402_v44 = vsel %vm1801_vm4, %v1798_v38, %v1804_v39  ;;  %v5404_v45 = vsel %vm1800_vm5, %v1797_v37, %v1803_v42  ;;  %v5542_v42 = vld [vmem:[#allocation11] ss:$0 sm:$0xff]  ;;  %vm3805_vm4 = vcmask 0  }
 0x30a   : > { %4351 = vmatprep.subr.mxu1 %v5402_v44  ;;  %v2163_v46 = vsel %vm1141_vm1, %v5404_v45, -inf  ;;  %v5409_v47 = vsel %vm1799_vm6, %v1796_v36, %v1802_v43  ;;  %v2164_v52 = vsel %vm1141_vm1, %v5402_v44, -inf }
 0x30b   : > { %4352 = vmatpush3.msra.mxu1 %v5402_v44  ;;  %v2162_v48 = vsel %vm1141_vm1, %v5409_v47, -inf }
 0x30c   : > { %4353 = vmatprep.subr.mxu1 %v5404_v45  ;;  %v2165_v50 = vmax.f32 %v2162_v48, %v2163_v46 }
 0x30d   : > { %4354 = vmatpush3.msra.mxu1 %v5404_v45 }
 0x30e   : > { %4355 = vmatprep.subr.mxu1 %v5409_v47  ;;  %v2166_v54 = vmax.f32 %v2165_v50, %v2164_v52 }
 0x30f   : > { %4356 = vmatpush3.msra.mxu1 %v5409_v47 }
 0x310   : > { %v2167_v56 = vrot.slane %v2166_v54, 4  ;;  %4358 = vmatmul.mubr.msk.f32.vlgmr.msra.gmra.mxu1 %vm1808_vm3, %v5256_v11  ;;  %4371 = vmatprep.subr.mxu1 %v5419_v53 }
 0x311   : > { %4372 = vmatpush3.msra.mxu1 %v5419_v53  ;;  %4379 = vmatprep.mubr.msk.f32.mxu1 %vm1141_vm1, %v5309_v29  ;;  %v5449_v29 = vld [vmem:[#allocation12] sm:$0xff] }
 0x312   : > { %v2168_v59 = vmax.f32 %v2166_v54, %v2167_v56  ;;  %4373 = vmatprep.subr.mxu1 %v5424_v55 }
 0x313   : > { %4374 = vmatpush3.msra.mxu1 %v5424_v55 }
 0x314   : > { %4375 = vmatprep.subr.mxu1 %v5433_v57  ;;  %v2169_v61 = vrot.slane %v2168_v59, 2 }
 0x315   : > { %4376 = vmatpush3.msra.mxu1 %v5433_v57 }
 0x316   : > { %4377 = vmatprep.subr.mxu1 %v5438_v60  ;;  %v2170_v0 = vmax.f32 %v2168_v59, %v2169_v61 }
 0x317   : > { %4378 = vmatpush3.msra.mxu1 %v5438_v60 }
 0x318   : > { %4380 = vmatmul.mubr.msk.f32.vlgmr.msra.gmra.mxu1 %vm1141_vm1, %v5307_v27  ;;  %4400 = vmatprep.subr.mxu1 %v4958_v2  ;;  %v5463_v27 = vld [vmem:[%s5797_s18 + $0x10] sm:$0xff]  ;;  %v2171_v5 = vrot.slane %v2170_v0, 1 }
 0x319   : > { %4401 = vmatpush3.msra.mxu1 %v5443_v62  ;;  %4404 = vmatprep.mubr.msk.f32.mxu1 %vm4959_vm0, %v4958_v2 }
 0x31a   : > { %4402 = vmatprep.subr.mxu1 %v4958_v2  ;;  %v2172_v8 = vmax.f32 %v2170_v0, %v2171_v5 }
 0x31b   : > { %4403 = vmatpush3.msra.mxu1 %v5449_v29 }
 0x31c   : > { %4405 = vmatmul.mubr.msk.f32.vlgmr.msra.gmra.mxu1 %vm1326_vm2, %v5380_v58  ;;  %4407 = vmatprep.subr.mxu1 %v4958_v2 }
 0x31d   : > { %4408 = vmatpush3.msra.mxu1 %v5456_v63  ;;  %4415 = vmatprep.mubr.msk.f32.mxu1 %vm4959_vm0, %v4958_v2 }
 0x31e   : > { %4409 = vmatprep.subr.mxu1 %v4958_v2 }
 0x31f   : > { %4410 = vmatpush3.msra.mxu1 %v5463_v27 }
 0x320   : > { %4411 = vmatprep.subr.mxu1 %v4958_v2 }
 0x321   : > { %4412 = vmatpush3.msra.mxu1 %v5470_v4 }
 0x322   : > { %4413 = vmatprep.subr.mxu1 %v4958_v2 }
 0x323   : > { %4414 = vmatpush3.msra.mxu1 %v5475_v6 }
 0x324   : > { %4416 = vmatmul.mubr.msk.f32.vlgmr.msra.gmra.mxu1 %vm1141_vm1, %v2172_v8  ;;  %4431 = vmatprep.subr.mxu1 %v4958_v2 }
 0x325   : > { %4432 = vmatpush3.msra.mxu1 %v5290_v21  ;;  %4439 = vmatprep.mubr.msk.f32.mxu1 %vm4959_vm0, %v4958_v2  ;;  %v5496_v21 = vld [vmem:[#allocation8] sm:$0xff] }
 0x326   : > { %4433 = vmatprep.subr.mxu1 %v4958_v2  ;;  %4366 = vmatprep.subr.mxu0 %v5496_v21 }
 0x327   : > { %4434 = vmatpush3.msra.mxu1 %v5294_v22  ;;  %4367 = vmatpush3.msra.mxu0 %v5496_v21 }
 0x328   : > { %4435 = vmatprep.subr.mxu1 %v4958_v2  ;;  %4382 = vmatprep.subr.mxu0 %v4958_v2 }
 0x329   : > { %4436 = vmatpush3.msra.mxu1 %v5300_v23 }
 0x32a   : > { %4437 = vmatprep.subr.mxu1 %v4958_v2 }
 0x32b   : > { %4438 = vmatpush3.msra.mxu1 %v5348_v40  ;;  %v5505_v40 = vld [vmem:[#allocation9] sm:$0xff] }
 0x32c   : > { %4465 = vmatprep.subr.mxu1 %v4958_v2 }
 0x3d0   : > { %v4359_v22 = vpop.f32.mrf.mxu1 }
 0x3d2   : > { %v1881_v23 = vpop.f32.mrf.mxu1 }
 0x3d3   : > { %4368 = vmatprep.mubr.msk.f32.mxu0 %vm1141_vm1, %v1881_v23 }
 0x3d4   : > { %4369 = vmatmul.mubr.msk.f32.vlgmr.msra.gmra.mxu0 %vm1141_vm1, %v4359_v22 }
 0x3d5   : > { %4383 = vmatpush3.msra.mxu0 %v5501_v10  ;;  %4386 = vmatprep.mubr.msk.f32.mxu0 %vm4959_vm0, %v4958_v2 }
 0x3d6   : > { %4384 = vmatprep.subr.mxu0 %v4958_v2 }
 0x3d7   : > { %4385 = vmatpush3.msra.mxu0 %v5505_v40 }
 0x3d8   : > { %v4381_v12 = vpop.f32.mrf.mxu1  ;;  %4387 = vmatmul.mubr.msk.f32.vlgmr.msra.gmra.mxu0 %vm1326_vm2, %v5380_v58  ;;  %4389 = vmatprep.subr.mxu0 %v4958_v2  ;;  %v5530_v58 = vld [vmem:[%s5798_s22 + $0x8] sm:$0xff] }
 0x3d9   : > { %4397 = vmatprep.mubr.msk.f32.mxu0 %vm4959_vm0, %v4958_v2  ;;  %4390 = vmatpush3.msra.mxu0 %v5522_v19 }
 0x3da   : > { %v2051_v14 = vpop.f32.mrf.mxu1  ;;  %4391 = vmatprep.subr.mxu0 %v4958_v2 }
 0x3db   : > { %4392 = vmatpush3.msra.mxu0 %v5525_v24 }
 0x3dc   : > { %v5517_v15 = vpop.f32.mrf.mxu1  ;;  %4393 = vmatprep.subr.mxu0 %v4958_v2 }
 0x3dd   : > { %4394 = vmatpush3.msra.mxu0 %v5530_v58 }
 0x3de   : > { %v4406_v16 = vpop.f32.mrf.mxu1  ;;  %4395 = vmatprep.subr.mxu0 %v4958_v2 }
 0x3df   : > { %4396 = vmatpush3.msra.mxu0 %v5535_v26 }
 0x3e0   : > { %4418 = vmatprep.subr.mxu0 %v4958_v2 }
 0x3e4   : > { %v5519_v17 = vpop.f32.mrf.mxu1 }
 0x3e6   : > { %v4417_v18 = vpop.f32.mrf.mxu1 }
 0x494   : > { %v4370_v28 = vpop.f32.mrf.mxu0 }
 0x495   : > { %v2057_v37 = vadd.f32 %v4381_v12, %v4370_v28 }
 0x496   : > { %v1970_v35 = vpop.f32.mrf.mxu0 }
 0x497   : > { %v2052_v38 = vadd.f32 %v2051_v14, %v1970_v35 }
 0x498   : > { %v2128_v36 = vpop.f32.mrf.mxu0 }
 0x499   : > { %v2135_v39 = vrot.slane %v2128_v36, %v5394_v13 }
 0x49a   : > { %v4388_v43 = vpop.f32.mrf.mxu0 }
 0x49b   : > { %v2136_v46 = vadd.f32 %v2135_v39, %v2052_v38  ;;  %v2137_v48 = vadd.f32 %v2135_v39, %v2057_v37 }
 0x49d   : > { %v2145_v50 = vadd.f32 %v5542_v42, %v2136_v46  ;;  %v2146_v52 = vadd.f32 %v5542_v42, %v2137_v48 }
 0x49f   : > { %vm2147_vm7 = vcmp.gt.f32.partialorder %v2145_v50, 0.0  ;;  %vm2148_vm8 = vcmp.gt.f32.partialorder %v2146_v52, 0.0  ;;  %v2149_v54 = vmul.f32 0.01, %v2145_v50  ;;  %v2150_v56 = vmul.f32 0.01, %v2146_v52 }
 0x4a1   : > { %v5546_v59 = vsel %vm2147_vm7, %v2145_v50, %v2149_v54  ;;  %v5548_v61 = vsel %vm2148_vm8, %v2146_v52, %v2150_v56 }
 0x4a2   : > { %v2153_v0 = vsel %vm1141_vm1, %v5546_v59, -inf  ;;  %v2154_v5 = vsel %vm1141_vm1, %v5548_v61, -inf }
 0x4a3   : > { %v2155_v8 = vmax.f32 %v2153_v0, %v2154_v5 }
 0x4a5   : > { %v2156_v22 = vrot.slane %v2155_v8, 4 }
 0x4a7   : > { %v2157_v23 = vmax.f32 %v2155_v8, %v2156_v22 }
 0x4a9   : > { %v2158_v12 = vrot.slane %v2157_v23, 2 }
 0x4ab   : > { %v2159_v14 = vmax.f32 %v2157_v23, %v2158_v12 }
 0x4ad   : > { %v2160_v16 = vrot.slane %v2159_v14, 1 }
 0x4af   : > { %v2161_v18 = vmax.f32 %v2159_v14, %v2160_v16 }
 0x4b1   : > { %4398 = vmatmul.mubr.msk.f32.vlgmr.msra.gmra.mxu0 %vm1141_vm1, %v2161_v18 }
 0x4b2   : > { %4419 = vmatpush3.msra.mxu0 %v5548_v61  ;;  %4422 = vmatprep.mubr.msk.f32.mxu0 %vm4959_vm0, %v4958_v2 }
 0x4b3   : > { %4420 = vmatprep.subr.mxu0 %v4958_v2 }
 0x4b4   : > { %4421 = vmatpush3.msra.mxu0 %v5546_v59 }
 0x4b5   : > { %4423 = vmatmul.mubr.msk.f32.vlgmr.msra.gmra.mxu0 %vm1326_vm2, %v5305_v25  ;;  %4448 = vmatprep.subr.mxu0 %v4958_v2 }
 0x4b6   : > { %4425 = vmatprep.mubr.msk.f32.mxu0 %vm4959_vm0, %v4958_v2  ;;  %4449 = vmatpush3.msra.mxu0 %v5314_v30 }
 0x4b7   : > { %4450 = vmatprep.subr.mxu0 %v4958_v2 }
 0x4b8   : > { %4451 = vmatpush3.msra.mxu0 %v5323_v32 }
 0x4b9   : > { %4426 = vmatmul.mubr.msk.f32.gmra.mxu0 %vm1326_vm2, %v5317_v31  ;;  %4452 = vmatprep.subr.mxu0 %v4958_v2 }
 0x4ba   : > { %4428 = vmatprep.mubr.msk.f32.mxu0 %vm4959_vm0, %v4958_v2  ;;  %4453 = vmatpush3.msra.mxu0 %v5330_v33 }
 0x4bb   : > { %4454 = vmatprep.subr.mxu0 %v4958_v2 }
 0x4bc   : > { %4455 = vmatpush3.msra.mxu0 %v5351_v41 }
 0x4bd   : > { %4429 = vmatmul.mubr.msk.f32.gmra.mxu0 %vm1326_vm2, %v5336_v34  ;;  %v5594_v34 = vld [vmem:[#allocation14] sm:$0x1] }
 0x4be   : > { %4456 = vmatprep.mubr.msk.f32.mxu0 %vm4959_vm0, %v4958_v2 }
 0x4c1   : > { %4457 = vmatmul.mubr.msk.f32.vlgmr.msra.gmra.mxu0 %vm1141_vm1, %v5409_v47 }
 0x4c2   : > { %4459 = vmatprep.mubr.msk.f32.mxu0 %vm4959_vm0, %v4958_v2 }
 0x4c5   : > { %4460 = vmatmul.mubr.msk.f32.gmra.mxu0 %vm1141_vm1, %v5404_v45 }
 0x4c6   : > { %4462 = vmatprep.mubr.msk.f32.mxu0 %vm4959_vm0, %v4958_v2 }
 0x4c9   : > { %4463 = vmatmul.mubr.msk.f32.gmra.mxu0 %vm1141_vm1, %v5402_v44 }
 0x4ca   : > { %4478 = vmatprep.mubr.msk.f32.mxu0 %vm1808_vm3, %v5250_v7 }
 0x571   : > { %v2248_v25 = vpop.f32.mrf.mxu0 }
 0x572   : > { %v2319_v30 = vadd.f32 %v5517_v15, %v2248_v25 }
 0x573   : > { %v4399_v31 = vpop.f32.mrf.mxu0 }
 0x574   : > { %v2399_v32 = vadd.f32 %v5519_v17, %v2319_v30 }
 0x575   : > { %v2471_v33 = vpop.f32.mrf.mxu0 }
 0x576   : > { %4440 = vmatmul.mubr.msk.f32.vlgmr.msra.gmra.mxu1 %vm1141_vm1, %v2471_v33  ;;  %v2401_v7 = vadd.f32 %v5594_v34, %v2399_v32 }
 0x577   : > { %v4424_v41 = vpop.f32.mrf.mxu0  ;;  %4442 = vmatprep.mubr.msk.f32.mxu1 %vm4959_vm0, %v4958_v2  ;;  %4466 = vmatpush3.msra.mxu1 %v5363_v49 }
 0x578   : > { %4467 = vmatprep.subr.mxu1 %v4958_v2  ;;  %v2403_v47 = vmul.f32 0.01, %v2401_v7  ;;  %vm2402_vm9 = vcmp.gt.f32.partialorder %v2401_v7, 0.0 }
 0x579   : > { %v2476_v44 = vpop.f32.mrf.mxu0  ;;  %4468 = vmatpush3.msra.mxu1 %v5366_v51 }
 0x57a   : > { %4443 = vmatmul.mubr.msk.f32.gmra.mxu1 %vm1141_vm1, %v2476_v44  ;;  %4481 = vmatprep.subr.mxu1 %v5386_v1  ;;  %v5610_v28 = vsel %vm2402_vm9, %v2401_v7, %v2403_v47 }
 0x57b   : > { %v4427_v45 = vpop.f32.mrf.mxu0  ;;  %4445 = vmatprep.mubr.msk.f32.mxu1 %vm4959_vm0, %v4958_v2 }
 0x57d   : > { %v2481_v15 = vpop.f32.mrf.mxu0 }
 0x57e   : > { %4446 = vmatmul.mubr.msk.f32.gmra.mxu1 %vm1141_vm1, %v2481_v15 }
 0x57f   : > { %v4430_v49 = vpop.f32.mrf.mxu0  ;;  %4469 = vmatprep.mubr.msk.f32.mxu1 %vm4959_vm0, %v4958_v2 }
 0x581   : > { %v2649_v17 = vpop.f32.mrf.mxu0 }
 0x582   : > { %4470 = vmatmul.mubr.msk.f32.vlgmr.msra.gmra.mxu1 %vm1326_vm2, %v5610_v28 }
 0x583   : > { %v4458_v51 = vpop.f32.mrf.mxu0  ;;  %4482 = vmatpush3.msra.mxu1 %v5386_v1 }
 0x584   : > { %4483 = vmatprep.subr.mxu1 %v5388_v3 }
 0x585   : > { %v2654_v35 = vpop.f32.mrf.mxu0  ;;  %4484 = vmatpush3.msra.mxu1 %v5388_v3 }
 0x586   : > { %4485 = vmatprep.subr.mxu1 %v5492_v9 }
 0x587   : > { %v4461_v36 = vpop.f32.mrf.mxu0  ;;  %4486 = vmatpush3.msra.mxu1 %v5492_v9 }
 0x588   : > { %4487 = vmatprep.subr.mxu1 %v5496_v21 }
 0x589   : > { %v2659_v37 = vpop.f32.mrf.mxu0  ;;  %4488 = vmatpush3.msra.mxu1 %v5496_v21 }
 0x58a   : > { %4503 = vmatprep.subr.mxu1 %v4958_v2 }
 0x58b   : > { %v4464_v38 = vpop.f32.mrf.mxu0 }
 0x636   : > { %v2560_v39 = vpop.f32.mrf.mxu1 }
 0x637   : > { %v2650_v52 = vadd.f32 %v2649_v17, %v2560_v39  ;;  %v3579_v39 = vld [vmem:[%s5800_s16 + $0x18] sm:$0xff] }
 0x638   : > { %v4441_v1 = vpop.f32.mrf.mxu1 }
 0x63a   : > { %v2565_v43 = vpop.f32.mrf.mxu1 }
 0x63b   : > { %v2655_v54 = vadd.f32 %v2654_v35, %v2565_v43 }
 0x63c   : > { %v4444_v46 = vpop.f32.mrf.mxu1 }
 0x63e   : > { %v2570_v48 = vpop.f32.mrf.mxu1 }
 0x63f   : > { %v2660_v56 = vadd.f32 %v2659_v37, %v2570_v48 }
 0x640   : > { %v4447_v50 = vpop.f32.mrf.mxu1 }
 0x642   : > { %v2732_v3 = vpop.f32.mrf.mxu1 }
 0x643   : > { %v2739_v9 = vrot.slane %v2732_v3, %v5394_v13  ;;  %v3577_v3 = vld [vmem:[%s5800_s16 + $0x8] sm:$0xff] }
 0x644   : > { %v4471_v0 = vpop.f32.mrf.mxu1 }
 0x645   : > { %v2740_v5 = vadd.f32 %v2739_v9, %v2650_v52  ;;  %v2741_v8 = vadd.f32 %v2739_v9, %v2655_v54  ;;  %v2742_v22 = vadd.f32 %v2739_v9, %v2660_v56  ;;  %v3576_v56 = vld [vmem:[%s5800_s16] sm:$0xff] }
 0x647   : > { %v2745_v21 = vadd.f32 %v5397_v20, %v2742_v22  ;;  %v2744_v23 = vadd.f32 %v5397_v20, %v2741_v8  ;;  %v2743_v12 = vadd.f32 %v5397_v20, %v2740_v5  ;;  %v3324_v22 = vld [vmem:[%s5801_s2 + $0x18] sm:$0xff] }
 0x649   : > { %vm2748_vm10 = vcmp.gt.f32.partialorder %v2745_v21, 0.0  ;;  %v2751_v14 = vmul.f32 0.01, %v2745_v21  ;;  %vm2747_vm11 = vcmp.gt.f32.partialorder %v2744_v23, 0.0  ;;  %v2750_v16 = vmul.f32 0.01, %v2744_v23 }
 0x64a   : > { %vm2746_vm12 = vcmp.gt.f32.partialorder %v2743_v12, 0.0  ;;  %v2749_v18 = vmul.f32 0.01, %v2743_v12 }
 0x64b   : > { %v2754_v25 = vsel %vm2748_vm10, %v2745_v21, %v2751_v14  ;;  %v2753_v30 = vsel %vm2747_vm11, %v2744_v23, %v2750_v16  ;;  %v3323_v21 = vld [vmem:[%s5801_s2 + $0x10] sm:$0xff]  ;;  %v3322_v23 = vld [vmem:[%s5801_s2 + $0x8] sm:$0xff]  ;;  %v3480_v16 = vld [vmem:[%s5802_s11] sm:$0xff] }
 0x64c   : > { %4472 = vmatprep.subr.mxu0 %v2754_v25  ;;  %v3086_v31 = vsel %vm1141_vm1, %v2753_v30, -inf  ;;  %v2752_v32 = vsel %vm2746_vm12, %v2743_v12, %v2749_v18  ;;  %v3087_v7 = vsel %vm1141_vm1, %v2754_v25, -inf  ;;  %v3321_v12 = vld [vmem:[%s5801_s2] sm:$0xff]  ;;  %v3481_v14 = vld [vmem:[%s5802_s11 + $0x8] sm:$0xff] }
 0x64d   : > { %4473 = vmatpush3.msra.mxu0 %v2754_v25  ;;  %v3085_v33 = vsel %vm1141_vm1, %v2752_v32, -inf }
 0x64e   : > { %4474 = vmatprep.subr.mxu0 %v2753_v30  ;;  %v3088_v41 = vmax.f32 %v3085_v33, %v3086_v31 }
 0x64f   : > { %4475 = vmatpush3.msra.mxu0 %v2753_v30 }
 0x650   : > { %4476 = vmatprep.subr.mxu0 %v2752_v32  ;;  %v3089_v20 = vmax.f32 %v3088_v41, %v3087_v7 }
 0x651   : > { %4477 = vmatpush3.msra.mxu0 %v2752_v32 }
 0x652   : > { %4479 = vmatmul.mubr.msk.f32.vlgmr.msra.gmra.mxu0 %vm1808_vm3, %v5256_v11  ;;  %4492 = vmatprep.subr.mxu0 %v5419_v53  ;;  %v3090_v11 = vrot.slane %v3089_v20, 4 }
 0x653   : > { %4493 = vmatpush3.msra.mxu0 %v5419_v53  ;;  %4500 = vmatprep.mubr.msk.f32.mxu0 %vm1141_vm1, %v5546_v59 }
 0x654   : > { %4494 = vmatprep.subr.mxu0 %v5424_v55 }
 0x655   : > { %4495 = vmatpush3.msra.mxu0 %v5424_v55  ;;  %v3091_v55 = vmax.f32 %v3089_v20, %v3090_v11 }
 0x656   : > { %4496 = vmatprep.subr.mxu0 %v5433_v57 }
 0x657   : > { %4497 = vmatpush3.msra.mxu0 %v5433_v57 }
 0x658   : > { %4498 = vmatprep.subr.mxu0 %v5438_v60 }
 0x659   : > { %4499 = vmatpush3.msra.mxu0 %v5438_v60  ;;  %v3092_v60 = vrot.slane %v3091_v55, 2 }
 0x65a   : > { %4501 = vmatmul.mubr.msk.f32.vlgmr.msra.gmra.mxu0 %vm1141_vm1, %v5548_v61  ;;  %4510 = vmatprep.subr.mxu0 %v4958_v2 }
 0x65b   : > { %4511 = vmatpush3.msra.mxu0 %v5522_v19  ;;  %4518 = vmatprep.mubr.msk.f32.mxu0 %vm4959_vm0, %v4958_v2  ;;  %v3093_v19 = vmax.f32 %v3091_v55, %v3092_v60  ;;  %v3583_v55 = vld [vmem:[%s5101_s14 + $0x18] sm:$0xff] }
 0x65c   : > { %4512 = vmatprep.subr.mxu0 %v4958_v2 }
 0x65d   : > { %4513 = vmatpush3.msra.mxu0 %v5525_v24 }
 0x65e   : > { %4514 = vmatprep.subr.mxu0 %v4958_v2 }
 0x65f   : > { %4515 = vmatpush3.msra.mxu0 %v5530_v58 }
 0x660   : > { %4516 = vmatprep.subr.mxu0 %v4958_v2 }
 0x661   : > { %4517 = vmatpush3.msra.mxu0 %v5535_v26 }
 0x662   : > { %4539 = vmatprep.subr.mxu0 %v4958_v2 }
 0x712   : > { %v4480_v53 = vpop.f32.mrf.mxu0 }
 0x714   : > { %v2821_v57 = vpop.f32.mrf.mxu0 }
 0x715   : > { %4489 = vmatprep.mubr.msk.f32.mxu1 %vm1141_vm1, %v2821_v57 }
 0x716   : > { %4490 = vmatmul.mubr.msk.f32.vlgmr.msra.gmra.mxu1 %vm1141_vm1, %v4480_v53 }
 0x717   : > { %4504 = vmatpush3.msra.mxu1 %v5501_v10  ;;  %4507 = vmatprep.mubr.msk.f32.mxu1 %vm4959_vm0, %v4958_v2  ;;  %v3319_v10 = vld [vmem:[%s5799_s28 + $0x10] sm:$0xff] }
 0x718   : > { %4505 = vmatprep.subr.mxu1 %v4958_v2 }
 0x719   : > { %4506 = vmatpush3.msra.mxu1 %v5505_v40  ;;  %v3317_v40 = vld [vmem:[%s5799_s28] sm:$0xff] }
 0x71a   : > { %4521 = vmatprep.subr.mxu1 %v4958_v2  ;;  %4508 = vmatmul.mubr.msk.f32.vlgmr.msra.gmra.mxu1 %vm1326_vm2, %v5610_v28 }
 0x71b   : > { %4522 = vmatpush3.msra.mxu1 %v5443_v62  ;;  %4525 = vmatprep.mubr.msk.f32.mxu1 %vm4959_vm0, %v4958_v2  ;;  %v3094_v62 = vrot.slane %v3093_v19, 1 }
 0x71c   : > { %4523 = vmatprep.subr.mxu1 %v4958_v2 }
 0x71d   : > { %4524 = vmatpush3.msra.mxu1 %v5449_v29  ;;  %v5680_v29 = vmax.f32 %v3093_v19, %v3094_v62  ;;  %v3582_v62 = vld [vmem:[%s5101_s14 + $0x10] sm:$0xff] }
 0x71e   : > { %4528 = vmatprep.subr.mxu1 %v4958_v2  ;;  %4526 = vmatmul.mubr.msk.f32.vlgmr.msra.gmra.mxu1 %vm1326_vm2, %v5610_v28 }
 0x71f   : > { %4529 = vmatpush3.msra.mxu1 %v5456_v63  ;;  %4536 = vmatprep.mubr.msk.f32.mxu1 %vm4959_vm0, %v4958_v2  ;;  %v3320_v63 = vld [vmem:[%s5799_s28 + $0x18] sm:$0xff] }
 0x720   : > { %4530 = vmatprep.subr.mxu1 %v4958_v2 }
 0x721   : > { %4531 = vmatpush3.msra.mxu1 %v5463_v27  ;;  %v3318_v27 = vld [vmem:[%s5799_s28 + $0x8] sm:$0xff] }
 0x722   : > { %4532 = vmatprep.subr.mxu1 %v4958_v2 }
 0x723   : > { %4533 = vmatpush3.msra.mxu1 %v5470_v4  ;;  %v4502_v4 = vpop.f32.mrf.mxu0 }
 0x724   : > { %4534 = vmatprep.subr.mxu1 %v4958_v2 }
 0x725   : > { %4535 = vmatpush3.msra.mxu1 %v5475_v6  ;;  %v2983_v58 = vpop.f32.mrf.mxu0 }
 0x726   : > { %4537 = vmatmul.mubr.msk.f32.vlgmr.msra.gmra.mxu1 %vm1141_vm1, %v5680_v29  ;;  %4550 = vmatprep.subr.mxu1 %v3320_v63 }
 0x727   : > { %4551 = vmatpush3.msra.mxu1 %v3320_v63 }
 0x728   : > { %4552 = vmatprep.subr.mxu1 %v3319_v10 }
 0x729   : > { %4553 = vmatpush3.msra.mxu1 %v3319_v10 }
 0x72a   : > { %4554 = vmatprep.subr.mxu1 %v3318_v27 }
 0x72b   : > { %4555 = vmatpush3.msra.mxu1 %v3318_v27  ;;  %v3580_v27 = vld [vmem:[%s5101_s14] sm:$0xff] }
 0x72c   : > { %4556 = vmatprep.subr.mxu1 %v3317_v40 }
 0x72d   : > { %4557 = vmatpush3.msra.mxu1 %v3317_v40  ;;  %v3725_v40 = vld [vmem:[%s5106_s3 + $0x8] sm:$0xff] }
 0x72e   : > { %4579 = vmatprep.subr.mxu1 %v4958_v2 }
 0x7d6   : > { %v4491_v24 = vpop.f32.mrf.mxu1 }
 0x7d7   : > { %v2989_v59 = vadd.f32 %v4502_v4, %v4491_v24  ;;  %v3724_v4 = vld [vmem:[%s5106_s3] sm:$0xff] }
 0x7d8   : > { %v2902_v6 = vpop.f32.mrf.mxu1 }
 0x7d9   : > { %v2984_v61 = vadd.f32 %v2983_v58, %v2902_v6  ;;  %v4100_v58 = vld [vmem:[#allocation2] ss:$0 sm:$0xff] }
 0x7da   : > { %v3058_v26 = vpop.f32.mrf.mxu1 }
 0x7db   : > { %v3065_v44 = vrot.slane %v3058_v26, %v5394_v13 }
 0x7dc   : > { %v4509_v45 = vpop.f32.mrf.mxu1 }
 0x7dd   : > { %v3066_v47 = vadd.f32 %v3065_v44, %v2984_v61  ;;  %v3067_v15 = vadd.f32 %v3065_v44, %v2989_v59 }
 0x7de   : > { %v3235_v49 = vpop.f32.mrf.mxu1 }
 0x7df   : > { %v3068_v17 = vadd.f32 %v5542_v42, %v3066_v47  ;;  %v3069_v28 = vadd.f32 %v5542_v42, %v3067_v15  ;;  %v3578_v42 = vld [vmem:[%s5800_s16 + $0x10] sm:$0xff] }
 0x7e0   : > { %v4527_v51 = vpop.f32.mrf.mxu1 }
 0x7e1   : > { %vm3071_vm13 = vcmp.gt.f32.partialorder %v3069_v28, 0.0  ;;  %v3073_v35 = vmul.f32 0.01, %v3069_v28  ;;  %vm3070_vm14 = vcmp.gt.f32.partialorder %v3068_v17, 0.0  ;;  %v3072_v36 = vmul.f32 0.01, %v3068_v17 }
 0x7e2   : > { %v3797_v51 = vld [vmem:[#allocation3] sm:$0x1] }
 0x7e3   : > { %v3074_v37 = vsel %vm3070_vm14, %v3068_v17, %v3072_v36  ;;  %v3075_v38 = vsel %vm3071_vm13, %v3069_v28, %v3073_v35 }
 0x7e4   : > { %v3076_v1 = vsel %vm1141_vm1, %v3074_v37, -inf  ;;  %v3077_v43 = vsel %vm1141_vm1, %v3075_v38, -inf  ;;  %4558 = vmatprep.mubr.msk.f32.mxu1 %vm1141_vm1, %v3074_v37 }
 0x7e5   : > { %v3078_v46 = vmax.f32 %v3076_v1, %v3077_v43  ;;  %4559 = vmatmul.mubr.msk.f32.vlgmr.msra.gmra.mxu1 %vm1141_vm1, %v3075_v38 }
 0x7e6   : > { %v3308_v48 = vpop.f32.mrf.mxu1  ;;  %4580 = vmatpush3.msra.mxu1 %v3579_v39  ;;  %4587 = vmatprep.mubr.msk.f32.mxu1 %vm4959_vm0, %v4958_v2 }
 0x7e7   : > { %v3079_v50 = vrot.slane %v3078_v46, 4  ;;  %4581 = vmatprep.subr.mxu1 %v4958_v2 }
 0x7e8   : > { %v4538_v52 = vpop.f32.mrf.mxu1  ;;  %4582 = vmatpush3.msra.mxu1 %v3578_v42 }
 0x7e9   : > { %v3080_v54 = vmax.f32 %v3078_v46, %v3079_v50  ;;  %4583 = vmatprep.subr.mxu1 %v4958_v2 }
 0x7ea   : > { %4584 = vmatpush3.msra.mxu1 %v3577_v3 }
 0x7eb   : > { %v3081_v9 = vrot.slane %v3080_v54, 2  ;;  %4585 = vmatprep.subr.mxu1 %v4958_v2 }
 0x7ec   : > { %4586 = vmatpush3.msra.mxu1 %v3576_v56 }
 0x7ed   : > { %v3082_v0 = vmax.f32 %v3080_v54, %v3081_v9 }
 0x7ef   : > { %v3083_v5 = vrot.slane %v3082_v0, 1 }
 0x7f1   : > { %v3084_v8 = vmax.f32 %v3082_v0, %v3083_v5 }
 0x7f3   : > { %4519 = vmatmul.mubr.msk.f32.vlgmr.msra.gmra.mxu0 %vm1141_vm1, %v3084_v8  ;;  %4588 = vmatmul.mubr.msk.f32.vlgmr.msra.gmra.mxu1 %vm1141_vm1, %v3084_v8 }
 0x7f4   : > { %4540 = vmatpush3.msra.mxu0 %v3324_v22  ;;  %4547 = vmatprep.mubr.msk.f32.mxu0 %vm4959_vm0, %v4958_v2 }
 0x7f5   : > { %4541 = vmatprep.subr.mxu0 %v4958_v2 }
 0x7f6   : > { %4542 = vmatpush3.msra.mxu0 %v3323_v21 }
 0x7f7   : > { %4543 = vmatprep.subr.mxu0 %v4958_v2 }
 0x7f8   : > { %4544 = vmatpush3.msra.mxu0 %v3322_v23 }
 0x7f9   : > { %4545 = vmatprep.subr.mxu0 %v4958_v2 }
 0x7fa   : > { %4546 = vmatpush3.msra.mxu0 %v3321_v12 }
 0x7fb   : > { %4548 = vmatmul.mubr.msk.f32.vlgmr.msra.gmra.mxu0 %vm1141_vm1, %v5680_v29  ;;  %4561 = vmatprep.subr.mxu0 %v4958_v2 }
 0x7fc   : > { %4565 = vmatprep.mubr.msk.f32.mxu0 %vm4959_vm0, %v4958_v2  ;;  %4562 = vmatpush3.msra.mxu0 %v3481_v14 }
 0x7fd   : > { %4563 = vmatprep.subr.mxu0 %v4958_v2 }
 0x7fe   : > { %4564 = vmatpush3.msra.mxu0 %v3480_v16 }
 0x7ff   : > { %4568 = vmatprep.subr.mxu0 %v4958_v2 }
 0x8a5   : > { %v4560_v18 = vpop.f32.mrf.mxu1 }
 0x8a7   : > { %v3471_v25 = vpop.f32.mrf.mxu1 }
 0x8b3   : > { %v3165_v30 = vpop.f32.mrf.mxu0  ;;  %v3720_v31 = vpop.f32.mrf.mxu1 }
 0x8b4   : > { %v3236_v32 = vadd.f32 %v3235_v49, %v3165_v30 }
 0x8b5   : > { %v4520_v33 = vpop.f32.mrf.mxu0  ;;  %v4589_v41 = vpop.f32.mrf.mxu1 }
 0x8b6   : > { %v3312_v7 = vadd.f32 %v3308_v48, %v3236_v32 }
 0x8b8   : > { %v3313_v20 = vadd.f32 %v3312_v7, %v5594_v34  ;;  %v3581_v34 = vld [vmem:[%s5101_s14 + $0x8] sm:$0xff] }
 0x8ba   : > { %v3315_v11 = vmul.f32 0.01, %v3313_v20  ;;  %vm3314_vm15 = vcmp.gt.f32.partialorder %v3313_v20, 0.0 }
 0x8bb   : > { %v3391_v53 = vpop.f32.mrf.mxu0 }
 0x8bc   : > { %v3398_v57 = vrot.slane %v3391_v53, %v5394_v13  ;;  %v3316_v60 = vsel %vm3314_vm15, %v3313_v20, %v3315_v11 }
 0x8bd   : > { %v4549_v19 = vpop.f32.mrf.mxu0  ;;  %4566 = vmatmul.mubr.msk.f32.vlgmr.msra.gmra.mxu0 %vm1326_vm2, %v3316_v60 }
 0x8be   : > { %v3472_v63 = vadd.f32 %v3471_v25, %v3398_v57  ;;  %v3477_v10 = vadd.f32 %v4560_v18, %v3398_v57  ;;  %4569 = vmatpush3.msra.mxu0 %v3583_v55  ;;  %4576 = vmatprep.mubr.msk.f32.mxu0 %vm4959_vm0, %v4958_v2 }
 0x8bf   : > { %4570 = vmatprep.subr.mxu0 %v4958_v2 }
 0x8c0   : > { %4571 = vmatpush3.msra.mxu0 %v3582_v62 }
 0x8c1   : > { %4572 = vmatprep.subr.mxu0 %v4958_v2 }
 0x8c2   : > { %4573 = vmatpush3.msra.mxu0 %v3581_v34 }
 0x8c3   : > { %4574 = vmatprep.subr.mxu0 %v4958_v2 }
 0x8c4   : > { %4575 = vmatpush3.msra.mxu0 %v3580_v27 }
 0x8c5   : > { %4577 = vmatmul.mubr.msk.f32.vlgmr.msra.gmra.mxu0 %vm1141_vm1, %v5680_v29  ;;  %4590 = vmatprep.subr.mxu0 %v4958_v2  ;;  %vm3802_vm1 = vcmask 7168  }
 0x8c6   : > { %4591 = vmatpush3.msra.mxu0 %v3725_v40  ;;  %4594 = vmatprep.mubr.msk.f32.mxu0 %vm4959_vm0, %v4958_v2 }
 0x8c7   : > { %4592 = vmatprep.subr.mxu0 %v4958_v2 }
 0x8c8   : > { %4593 = vmatpush3.msra.mxu0 %v3724_v4 }
 0x8c9   : > { %4595 = vmatmul.mubr.msk.f32.vlgmr.msra.gmra.mxu0 %vm1326_vm2, %v3316_v60 }
 0x97d   : > { %v3551_v24 = vpop.f32.mrf.mxu0 }
 0x97e   : > { %v3558_v6 = vrot.slane %v3551_v24, %v5394_v13 }
 0x97f   : > { %v4567_v26 = vpop.f32.mrf.mxu0 }
 0x980   : > { %v3559_v29 = vadd.f32 %v3558_v6, %v3472_v63  ;;  %v3560_v59 = vadd.f32 %v3558_v6, %v3477_v10 }
 0x982   : > { %v3568_v61 = vadd.f32 %v4100_v58, %v3559_v29  ;;  %v3569_v44 = vadd.f32 %v4100_v58, %v3560_v59 }
 0x984   : > { %vm3570_vm3 = vcmp.gt.f32.partialorder %v3568_v61, 0.0  ;;  %vm3571_vm0 = vcmp.gt.f32.partialorder %v3569_v44, 0.0  ;;  %v3572_v45 = vmul.f32 0.01, %v3568_v61  ;;  %v3573_v2 = vmul.f32 0.01, %v3569_v44 }
 0x985   : > { %v3650_v47 = vpop.f32.mrf.mxu0 }
 0x986   : > { %v3574_v15 = vsel %vm3570_vm3, %v3568_v61, %v3572_v45  ;;  %v3575_v49 = vsel %vm3571_vm0, %v3569_v44, %v3573_v2  ;;  %v3721_v17 = vadd.f32 %v3720_v31, %v3650_v47 }
 0x987   : > { %3803 = vst.msk [vmem:[%s1118_s7] sm:$0xff] %vm3802_vm1, %v3574_v15  ;;  %3804 = vst.msk [vmem:[%s1118_s7 + $0x8] sm:$0xff] %vm3802_vm1, %v3575_v49  ;;  %v4578_v13 = vpop.f32.mrf.mxu0 }
 0x989   : > { %v3792_v28 = vpop.f32.mrf.mxu0 }
 0x98a   : > { %v3796_v35 = vadd.f32 %v3792_v28, %v3721_v17 }
 0x98b   : > { %v4596_v36 = vpop.f32.mrf.mxu0 }
 0x98c   : > { %v3798_v37 = vadd.f32 %v3797_v51, %v3796_v35 }
 0x98e   : > { %vm3799_vm2 = vcmp.gt.f32.partialorder %v3798_v37, 0.0  ;;  %v3800_v38 = vmul.f32 0.01, %v3798_v37 }
 0x990   : > { %v3801_v39 = vsel %vm3799_vm2, %v3798_v37, %v3800_v38 }
 0x991   : > { %3806 = vst.msk [vmem:[%s1121_s26] sm:$0x1] %vm3805_vm4, %v3801_v39 }
 0x992 PF: > { %s82_s23 = sadd.s32 1, %s4916_s23  }
 0x993   : > { %p79_p7 = scmp.ge.s32.totalorder %s82_s23, 4  }
 0x995   :  { %81 = sbr.rel (!%p79_p7) target bundleno = 57 (0x39), region = 251 }
 0x99a   :  { %3840 = vsyncpa [#allocation5], 1 }
 0x99b   :  { %3842 = vsyncpa [#allocation5 + $0x1], 1 }
 0x99c   :  { %3843 = vsyncpa [#allocation7], 1 }
 0x99d   :  { %3844 = vsyncpa [#allocation10], 1 }
 0x99e   :  { %3845 = vsyncpa [#allocation13], 1 }

</bundles_post_ra>
